<compile_context>
chip_gen: v7x
topology: tpu7x:2x2x1
jax: 0.10.0
libtpu: 0.0.40
codegen_flags: <defaults>
</compile_context>

<pallas_src>
import jax
import jax.numpy as jnp
from jax.experimental import pallas as pl
from jax.experimental.pallas import tpu as pltpu

# ----------------------------- model config (small, synthetic) -----------------------------
BATCH = 2
SEQ = 8
HIDDEN = 32          # opt.embed_dim == bert hidden size
HEADS = 4
HEAD_DIM = HIDDEN // HEADS
FFN = 64
LAYERS = 2
VOCAB = 50
TYPE_VOCAB = 2
POLARITIES = 3       # opt.polarities_dim
OUT_LANES = 128      # both kernel outputs padded to a full lane tile (unmasked stores)
LN_EPS = 1e-12


# ----------------------------- fused Pallas kernel -----------------------------
def _bert_spc_kernel(x_ref, mask_ref, emb_g_ref, emb_b_ref,
                     wqkv_ref, bqkv_ref, wo_ref, bo_ref, ln1g_ref, ln1b_ref,
                     w1_ref, b1_ref, w2_ref, b2_ref, ln2g_ref, ln2b_ref,
                     poolw_ref, poolb_ref, clsw_ref, clsb_ref,
                     hidden_ref, logits_ref):
    """One grid step == one batch element. Everything stays resident in VMEM."""
    f32 = jnp.float32

    def ln(h, g, b):
        mu = jnp.mean(h, axis=-1, keepdims=True)
        var = jnp.mean((h - mu) * (h - mu), axis=-1, keepdims=True)
        return (h - mu) * jax.lax.rsqrt(var + LN_EPS) * g + b

    def dot(a, b):                      # a @ b, f32 accumulation on the MXU
        return jax.lax.dot_general(a, b, (((1,), (0,)), ((), ())),
                                   preferred_element_type=f32)

    def dot_nt(a, b):                   # a @ b.T
        return jax.lax.dot_general(a, b, (((1,), (1,)), ((), ())),
                                   preferred_element_type=f32)

    x = x_ref[...].astype(f32)          # (S, D) word+pos+type embedding sum
    # Hoist the mask broadcast out of the layer/head loops (no CSE of broadcast_in_dim).
    mask_bias = jnp.broadcast_to(mask_ref[...], (SEQ, SEQ))   # 0 valid / -1e9 padding
    x = ln(x, emb_g_ref[...], emb_b_ref[...])

    scale = 1.0 / (HEAD_DIM ** 0.5)
    for l in range(LAYERS):             # static unroll over layers
        # ---- self-attention: fused QKV matmul, per-head softmax, fused out-proj ----
        qkv = dot(x, wqkv_ref[l]) + bqkv_ref[l]          # (S, 3D)
        wo_l = wo_ref[l]                                 # (D, D)
        attn = jnp.zeros((SEQ, HIDDEN), f32)
        for h in range(HEADS):
            lo = h * HEAD_DIM
            qh = qkv[:, lo:lo + HEAD_DIM] * scale                    # (S, Dh)
            kh = qkv[:, HIDDEN + lo:HIDDEN + lo + HEAD_DIM]          # (S, Dh)
            vh = qkv[:, 2 * HIDDEN + lo:2 * HIDDEN + lo + HEAD_DIM]  # (S, Dh)
            s = dot_nt(qh, kh) + mask_bias                           # (S, S)
            m = jnp.max(s, axis=-1, keepdims=True)
            p = jnp.exp(s - m)
            p = p * pl.reciprocal(jnp.sum(p, axis=-1, keepdims=True), approx=True)
            ctx = dot(p, vh)                                         # (S, Dh)
            # sum_h ctx_h @ wo[h*Dh:(h+1)*Dh, :] == concat(ctx) @ wo
            attn = attn + dot(ctx, wo_l[lo:lo + HEAD_DIM, :])
        attn = attn + bo_ref[l]
        x = ln(x + attn, ln1g_ref[l], ln1b_ref[l])

        # ---- feed-forward ----
        h1 = dot(x, w1_ref[l]) + b1_ref[l]               # (S, FFN)
        # tanh-approx GELU (HF BERT uses erf-GELU; tanh approximation kept for Mosaic lowering)
        h1 = 0.5 * h1 * (1.0 + jnp.tanh(0.7978845608028654 *
                                        (h1 + 0.044715 * h1 * h1 * h1)))
        ff = dot(h1, w2_ref[l]) + b2_ref[l]              # (S, D)
        x = ln(x + ff, ln2g_ref[l], ln2b_ref[l])

    # ---- pooler (tanh dense on CLS token) + classifier, both lane-padded to 128 ----
    cls = x[0:1, :]                                      # (1, D)
    # pool_w is zero-padded to (D, 128): lanes >= HIDDEN stay tanh(0) = 0.
    pooled_pad = jnp.tanh(dot(cls, poolw_ref[...]) + poolb_ref[...])   # (1, 128)
    hidden_ref[...] = pooled_pad.astype(hidden_ref.dtype)
    # TODO(synk): nn.Dropout(opt.dropout) — identity in eval mode; training-mode RNG dropout not applied.
    # cls_w is zero-padded to (128, 128): padded input lanes are ignored, no in-kernel slicing.
    logits_pad = dot(pooled_pad, clsw_ref[...]) + clsb_ref[...]        # (1, 128)
    logits_ref[...] = logits_pad.astype(logits_ref.dtype)


# ----------------------------- parameter init (deterministic, synthetic) -----------------------------
def init_params(key):
    def nrm(k, shape, scale=0.02):
        return (scale * jax.random.normal(k, shape)).astype(jnp.float32)

    keys = iter(jax.random.split(key, 16))
    p = {
        "word_emb": nrm(next(keys), (VOCAB, HIDDEN)),
        "pos_emb": nrm(next(keys), (SEQ, HIDDEN)),
        "type_emb": nrm(next(keys), (TYPE_VOCAB, HIDDEN)),
        "emb_ln_g": jnp.ones((1, HIDDEN), jnp.float32),
        "emb_ln_b": jnp.zeros((1, HIDDEN), jnp.float32),
        # per-layer weights stacked along a leading LAYERS axis (indexed statically in-kernel)
        "wqkv": nrm(next(keys), (LAYERS, HIDDEN, 3 * HIDDEN)),
        "bqkv": jnp.zeros((LAYERS, 1, 3 * HIDDEN), jnp.float32),
        "wo": nrm(next(keys), (LAYERS, HIDDEN, HIDDEN)),
        "bo": jnp.zeros((LAYERS, 1, HIDDEN), jnp.float32),
        "ln1_g": jnp.ones((LAYERS, 1, HIDDEN), jnp.float32),
        "ln1_b": jnp.zeros((LAYERS, 1, HIDDEN), jnp.float32),
        "w1": nrm(next(keys), (LAYERS, HIDDEN, FFN)),
        "b1": jnp.zeros((LAYERS, 1, FFN), jnp.float32),
        "w2": nrm(next(keys), (LAYERS, FFN, HIDDEN)),
        "b2": jnp.zeros((LAYERS, 1, HIDDEN), jnp.float32),
        "ln2_g": jnp.ones((LAYERS, 1, HIDDEN), jnp.float32),
        "ln2_b": jnp.zeros((LAYERS, 1, HIDDEN), jnp.float32),
    }
    pool_w = nrm(next(keys), (HIDDEN, HIDDEN))
    pool_b = jnp.zeros((HIDDEN,), jnp.float32)
    cls_w = nrm(next(keys), (HIDDEN, POLARITIES))
    cls_b = jnp.zeros((POLARITIES,), jnp.float32)
    # Zero-pad pooler / classifier so all kernel stores hit full 128-lane tiles.
    p["pool_w_pad"] = jnp.zeros((HIDDEN, OUT_LANES), jnp.float32).at[:, :HIDDEN].set(pool_w)
    p["pool_b_pad"] = jnp.zeros((1, OUT_LANES), jnp.float32).at[0, :HIDDEN].set(pool_b)
    p["cls_w_pad"] = jnp.zeros((OUT_LANES, OUT_LANES), jnp.float32).at[:HIDDEN, :POLARITIES].set(cls_w)
    p["cls_b_pad"] = jnp.zeros((1, OUT_LANES), jnp.float32).at[0, :POLARITIES].set(cls_b)
    return p


# ----------------------------- forward pass -----------------------------
def bert_spc_forward(params, text_bert_indices):
    """Returns {'logits': (B, POLARITIES), 'hidden_state': (B, HIDDEN)}."""
    B, S = text_bert_indices.shape

    # Embedding lookups stay in XLA (tiny gather glue); the rest is one fused Pallas call.
    word = jnp.take(params["word_emb"], text_bert_indices, axis=0)            # (B, S, D)
    # token_type_ids are not passed by BERT_SPC, so all tokens use segment 0 (HF default).
    emb = (word + params["pos_emb"][None, :S, :]
           + params["type_emb"][0][None, None, :]).astype(jnp.float32)
    # Padding attention mask from (indices != 0), as in the pyabsa pipeline (additive bias).
    mask_bias = jnp.where(text_bert_indices != 0, 0.0, -1e9).astype(jnp.float32)[:, None, :]

    def wspec2(shape):
        return pl.BlockSpec(shape, lambda b: (0, 0))

    def wspec3(shape):
        return pl.BlockSpec(shape, lambda b: (0, 0, 0))

    hidden_pad, logits_pad = pl.pallas_call(
        _bert_spc_kernel,
        out_shape=(jax.ShapeDtypeStruct((B, 1, OUT_LANES), jnp.float32),
                   jax.ShapeDtypeStruct((B, 1, OUT_LANES), jnp.float32)),
        grid=(B,),
        in_specs=[
            pl.BlockSpec((None, S, HIDDEN), lambda b: (b, 0, 0)),    # embedding sum
            pl.BlockSpec((None, 1, S), lambda b: (b, 0, 0)),         # attention mask bias
            wspec2((1, HIDDEN)), wspec2((1, HIDDEN)),                # emb LN gamma/beta
            wspec3((LAYERS, HIDDEN, 3 * HIDDEN)), wspec3((LAYERS, 1, 3 * HIDDEN)),  # QKV
            wspec3((LAYERS, HIDDEN, HIDDEN)), wspec3((LAYERS, 1, HIDDEN)),          # out proj
            wspec3((LAYERS, 1, HIDDEN)), wspec3((LAYERS, 1, HIDDEN)),               # LN1
            wspec3((LAYERS, HIDDEN, FFN)), wspec3((LAYERS, 1, FFN)),                # FFN up
            wspec3((LAYERS, FFN, HIDDEN)), wspec3((LAYERS, 1, HIDDEN)),             # FFN down
            wspec3((LAYERS, 1, HIDDEN)), wspec3((LAYERS, 1, HIDDEN)),               # LN2
            wspec2((HIDDEN, OUT_LANES)), wspec2((1, OUT_LANES)),                    # pooler (padded)
            wspec2((OUT_LANES, OUT_LANES)), wspec2((1, OUT_LANES)),                 # classifier (padded)
        ],
        out_specs=(pl.BlockSpec((None, 1, OUT_LANES), lambda b: (b, 0, 0)),
                   pl.BlockSpec((None, 1, OUT_LANES), lambda b: (b, 0, 0))),
        compiler_params=pltpu.CompilerParams(dimension_semantics=("parallel",)),
    )(emb, mask_bias,
      params["emb_ln_g"], params["emb_ln_b"],
      params["wqkv"], params["bqkv"], params["wo"], params["bo"],
      params["ln1_g"], params["ln1_b"],
      params["w1"], params["b1"], params["w2"], params["b2"],
      params["ln2_g"], params["ln2_b"],
      params["pool_w_pad"], params["pool_b_pad"],
      params["cls_w_pad"], params["cls_b_pad"])

    hidden_state = hidden_pad.reshape(B, OUT_LANES)[:, :HIDDEN]
    logits = logits_pad.reshape(B, OUT_LANES)[:, :POLARITIES]
    return {"logits": logits, "hidden_state": hidden_state}


# ----------------------------- main -----------------------------
if __name__ == "__main__":
    key = jax.random.PRNGKey(0)
    pkey, ikey = jax.random.split(key)
    params = init_params(pkey)
    text_bert_indices = jax.random.randint(ikey, (BATCH, SEQ), 0, VOCAB, dtype=jnp.int32)

    out = jax.jit(bert_spc_forward)(params, text_bert_indices)
    jax.block_until_ready(out)

    assert out["logits"].shape == (BATCH, POLARITIES)
    assert out["hidden_state"].shape == (BATCH, HIDDEN)
    assert jnp.all(jnp.isfinite(out["logits"]))
    assert jnp.all(jnp.isfinite(out["hidden_state"]))
    print("KERNEL_OK")
</pallas_src>

<mosaic_0001>
module attributes {stable_mosaic.version = 11 : i64} {
  func.func @_bert_spc_kernel(%arg0: i32, %arg1: memref<1x8x32xf32, #tpu.memory_space<vmem>>, %arg2: memref<1x1x8xf32, #tpu.memory_space<vmem>>, %arg3: memref<1x32xf32, #tpu.memory_space<vmem>>, %arg4: memref<1x32xf32, #tpu.memory_space<vmem>>, %arg5: memref<2x32x96xf32, #tpu.memory_space<vmem>>, %arg6: memref<2x1x96xf32, #tpu.memory_space<vmem>>, %arg7: memref<2x32x32xf32, #tpu.memory_space<vmem>>, %arg8: memref<2x1x32xf32, #tpu.memory_space<vmem>>, %arg9: memref<2x1x32xf32, #tpu.memory_space<vmem>>, %arg10: memref<2x1x32xf32, #tpu.memory_space<vmem>>, %arg11: memref<2x32x64xf32, #tpu.memory_space<vmem>>, %arg12: memref<2x1x64xf32, #tpu.memory_space<vmem>>, %arg13: memref<2x64x32xf32, #tpu.memory_space<vmem>>, %arg14: memref<2x1x32xf32, #tpu.memory_space<vmem>>, %arg15: memref<2x1x32xf32, #tpu.memory_space<vmem>>, %arg16: memref<2x1x32xf32, #tpu.memory_space<vmem>>, %arg17: memref<32x128xf32, #tpu.memory_space<vmem>>, %arg18: memref<1x128xf32, #tpu.memory_space<vmem>>, %arg19: memref<128x128xf32, #tpu.memory_space<vmem>>, %arg20: memref<1x128xf32, #tpu.memory_space<vmem>>, %arg21: memref<1x1x128xf32, #tpu.memory_space<vmem>>, %arg22: memref<1x1x128xf32, #tpu.memory_space<vmem>>) attributes {dimension_semantics = [#tpu.dimension_semantics<parallel>], iteration_bounds = array<i64: 2>, scalar_prefetch = 0 : i64, scratch_operands = 0 : i64, tpu.core_type = #tpu.core_type<tc>, window_params = [{transform_indices = @transform_0, window_bounds = array<i64: 1, 8, 32>}, {transform_indices = @transform_1, window_bounds = array<i64: 1, 1, 8>}, {pipeline_mode = #tpu.pipeline_mode<synchronous>, transform_indices = @transform_2, window_bounds = array<i64: 1, 32>}, {pipeline_mode = #tpu.pipeline_mode<synchronous>, transform_indices = @transform_3, window_bounds = array<i64: 1, 32>}, {pipeline_mode = #tpu.pipeline_mode<synchronous>, transform_indices = @transform_4, window_bounds = array<i64: 2, 32, 96>}, {pipeline_mode = #tpu.pipeline_mode<synchronous>, transform_indices = @transform_5, window_bounds = array<i64: 2, 1, 96>}, {pipeline_mode = #tpu.pipeline_mode<synchronous>, transform_indices = @transform_6, window_bounds = array<i64: 2, 32, 32>}, {pipeline_mode = #tpu.pipeline_mode<synchronous>, transform_indices = @transform_7, window_bounds = array<i64: 2, 1, 32>}, {pipeline_mode = #tpu.pipeline_mode<synchronous>, transform_indices = @transform_8, window_bounds = array<i64: 2, 1, 32>}, {pipeline_mode = #tpu.pipeline_mode<synchronous>, transform_indices = @transform_9, window_bounds = array<i64: 2, 1, 32>}, {pipeline_mode = #tpu.pipeline_mode<synchronous>, transform_indices = @transform_10, window_bounds = array<i64: 2, 32, 64>}, {pipeline_mode = #tpu.pipeline_mode<synchronous>, transform_indices = @transform_11, window_bounds = array<i64: 2, 1, 64>}, {pipeline_mode = #tpu.pipeline_mode<synchronous>, transform_indices = @transform_12, window_bounds = array<i64: 2, 64, 32>}, {pipeline_mode = #tpu.pipeline_mode<synchronous>, transform_indices = @transform_13, window_bounds = array<i64: 2, 1, 32>}, {pipeline_mode = #tpu.pipeline_mode<synchronous>, transform_indices = @transform_14, window_bounds = array<i64: 2, 1, 32>}, {pipeline_mode = #tpu.pipeline_mode<synchronous>, transform_indices = @transform_15, window_bounds = array<i64: 2, 1, 32>}, {pipeline_mode = #tpu.pipeline_mode<synchronous>, transform_indices = @transform_16, window_bounds = array<i64: 32, 128>}, {pipeline_mode = #tpu.pipeline_mode<synchronous>, transform_indices = @transform_17, window_bounds = array<i64: 1, 128>}, {pipeline_mode = #tpu.pipeline_mode<synchronous>, transform_indices = @transform_18, window_bounds = array<i64: 128, 128>}, {pipeline_mode = #tpu.pipeline_mode<synchronous>, transform_indices = @transform_19, window_bounds = array<i64: 1, 128>}, {transform_indices = @transform_20, window_bounds = array<i64: 1, 1, 128>}, {transform_indices = @transform_21, window_bounds = array<i64: 1, 1, 128>}]} {
    %c0 = arith.constant 0 : index
    %c0_0 = arith.constant 0 : index
    %c0_1 = arith.constant 0 : index
    %0 = vector.load %arg1[%c0, %c0_0, %c0_1] : memref<1x8x32xf32, #tpu.memory_space<vmem>>, vector<1x8x32xf32>
    %1 = vector.shape_cast %0 : vector<1x8x32xf32> to vector<8x32xf32>
    %c0_2 = arith.constant 0 : index
    %c0_3 = arith.constant 0 : index
    %c0_4 = arith.constant 0 : index
    %2 = vector.load %arg2[%c0_2, %c0_3, %c0_4] : memref<1x1x8xf32, #tpu.memory_space<vmem>>, vector<1x1x8xf32>
    %3 = vector.shape_cast %2 : vector<1x1x8xf32> to vector<1x8xf32>
    %4 = vector.shape_cast %3 : vector<1x8xf32> to vector<1x8xf32>
    %5 = vector.broadcast %4 : vector<1x8xf32> to vector<8x8xf32>
    %c0_5 = arith.constant 0 : index
    %c0_6 = arith.constant 0 : index
    %6 = vector.load %arg3[%c0_5, %c0_6] : memref<1x32xf32, #tpu.memory_space<vmem>>, vector<1x32xf32>
    %c0_7 = arith.constant 0 : index
    %c0_8 = arith.constant 0 : index
    %7 = vector.load %arg4[%c0_7, %c0_8] : memref<1x32xf32, #tpu.memory_space<vmem>>, vector<1x32xf32>
    %cst = arith.constant dense<0.000000e+00> : vector<8xf32>
    %8 = vector.multi_reduction <add>, %1, %cst [1] : vector<8x32xf32> to vector<8xf32>
    %9 = vector.shape_cast %8 : vector<8xf32> to vector<8x1xf32>
    %cst_9 = arith.constant 3.200000e+01 : f32
    %10 = vector.broadcast %cst_9 : f32 to vector<8x1xf32>
    %11 = arith.divf %9, %10 : vector<8x1xf32>
    %12 = vector.broadcast %11 : vector<8x1xf32> to vector<8x32xf32>
    %13 = arith.subf %1, %12 : vector<8x32xf32>
    %14 = vector.broadcast %11 : vector<8x1xf32> to vector<8x32xf32>
    %15 = arith.subf %1, %14 : vector<8x32xf32>
    %16 = arith.mulf %13, %15 : vector<8x32xf32>
    %cst_10 = arith.constant dense<0.000000e+00> : vector<8xf32>
    %17 = vector.multi_reduction <add>, %16, %cst_10 [1] : vector<8x32xf32> to vector<8xf32>
    %18 = vector.shape_cast %17 : vector<8xf32> to vector<8x1xf32>
    %cst_11 = arith.constant 3.200000e+01 : f32
    %19 = vector.broadcast %cst_11 : f32 to vector<8x1xf32>
    %20 = arith.divf %18, %19 : vector<8x1xf32>
    %21 = vector.broadcast %11 : vector<8x1xf32> to vector<8x32xf32>
    %22 = arith.subf %1, %21 : vector<8x32xf32>
    %cst_12 = arith.constant 9.99999996E-13 : f32
    %23 = vector.broadcast %cst_12 : f32 to vector<8x1xf32>
    %24 = arith.addf %20, %23 : vector<8x1xf32>
    %25 = math.rsqrt %24 : vector<8x1xf32>
    %26 = vector.broadcast %25 : vector<8x1xf32> to vector<8x32xf32>
    %27 = arith.mulf %22, %26 : vector<8x32xf32>
    %28 = vector.broadcast %6 : vector<1x32xf32> to vector<8x32xf32>
    %29 = arith.mulf %27, %28 : vector<8x32xf32>
    %30 = vector.broadcast %7 : vector<1x32xf32> to vector<8x32xf32>
    %31 = arith.addf %29, %30 : vector<8x32xf32>
    %c0_13 = arith.constant 0 : index
    %c0_14 = arith.constant 0 : index
    %c0_15 = arith.constant 0 : index
    %32 = vector.load %arg5[%c0_13, %c0_14, %c0_15] : memref<2x32x96xf32, #tpu.memory_space<vmem>>, vector<1x32x96xf32>
    %33 = vector.shape_cast %32 : vector<1x32x96xf32> to vector<32x96xf32>
    %cst_16 = arith.constant dense<0.000000e+00> : vector<8x96xf32>
    %34 = tpu.matmul %31, %33, %cst_16 {dimension_numbers = #tpu.dot_dimension_numbers<[1], [0], [0], [1], [0, 0, 1, 1], [], []>} : vector<8x32xf32>, vector<32x96xf32>, vector<8x96xf32> -> vector<8x96xf32>
    %c0_17 = arith.constant 0 : index
    %c0_18 = arith.constant 0 : index
    %c0_19 = arith.constant 0 : index
    %35 = vector.load %arg6[%c0_17, %c0_18, %c0_19] : memref<2x1x96xf32, #tpu.memory_space<vmem>>, vector<1x1x96xf32>
    %36 = vector.shape_cast %35 : vector<1x1x96xf32> to vector<1x96xf32>
    %37 = vector.broadcast %36 : vector<1x96xf32> to vector<8x96xf32>
    %38 = arith.addf %34, %37 : vector<8x96xf32>
    %c0_20 = arith.constant 0 : index
    %c0_21 = arith.constant 0 : index
    %c0_22 = arith.constant 0 : index
    %39 = vector.load %arg7[%c0_20, %c0_21, %c0_22] : memref<2x32x32xf32, #tpu.memory_space<vmem>>, vector<1x32x32xf32>
    %40 = vector.shape_cast %39 : vector<1x32x32xf32> to vector<32x32xf32>
    %cst_23 = arith.constant 0.000000e+00 : f32
    %41 = vector.broadcast %cst_23 : f32 to vector<8x32xf32>
    %42 = vector.extract_strided_slice %38 {offsets = [0, 0], sizes = [8, 8], strides = [1, 1]} : vector<8x96xf32> to vector<8x8xf32>
    %cst_24 = arith.constant 0.353553385 : f32
    %43 = vector.broadcast %cst_24 : f32 to vector<8x8xf32>
    %44 = arith.mulf %42, %43 : vector<8x8xf32>
    %45 = vector.extract_strided_slice %38 {offsets = [0, 32], sizes = [8, 8], strides = [1, 1]} : vector<8x96xf32> to vector<8x8xf32>
    %46 = vector.extract_strided_slice %38 {offsets = [0, 64], sizes = [8, 8], strides = [1, 1]} : vector<8x96xf32> to vector<8x8xf32>
    %cst_25 = arith.constant dense<0.000000e+00> : vector<8x8xf32>
    %47 = tpu.matmul %44, %45, %cst_25 {dimension_numbers = #tpu.dot_dimension_numbers<[1], [1], [0], [0], [0, 0, 1, 0], [], []>} : vector<8x8xf32>, vector<8x8xf32>, vector<8x8xf32> -> vector<8x8xf32>
    %48 = arith.addf %47, %5 : vector<8x8xf32>
    %cst_26 = arith.constant dense<0xFF800000> : vector<8xf32>
    %49 = vector.multi_reduction <maximumf>, %48, %cst_26 [1] : vector<8x8xf32> to vector<8xf32>
    %50 = vector.shape_cast %49 : vector<8xf32> to vector<8x1xf32>
    %51 = vector.broadcast %50 : vector<8x1xf32> to vector<8x8xf32>
    %52 = arith.subf %48, %51 : vector<8x8xf32>
    %53 = math.exp %52 : vector<8x8xf32>
    %cst_27 = arith.constant dense<0.000000e+00> : vector<8xf32>
    %54 = vector.multi_reduction <add>, %53, %cst_27 [1] : vector<8x8xf32> to vector<8xf32>
    %55 = vector.shape_cast %54 : vector<8xf32> to vector<8x1xf32>
    %56 = tpu.reciprocal %55 {approx = true} : vector<8x1xf32> -> vector<8x1xf32>
    %57 = vector.broadcast %56 : vector<8x1xf32> to vector<8x8xf32>
    %58 = arith.mulf %53, %57 : vector<8x8xf32>
    %cst_28 = arith.constant dense<0.000000e+00> : vector<8x8xf32>
    %59 = tpu.matmul %58, %46, %cst_28 {dimension_numbers = #tpu.dot_dimension_numbers<[1], [0], [0], [1], [0, 0, 1, 1], [], []>} : vector<8x8xf32>, vector<8x8xf32>, vector<8x8xf32> -> vector<8x8xf32>
    %60 = vector.extract_strided_slice %40 {offsets = [0, 0], sizes = [8, 32], strides = [1, 1]} : vector<32x32xf32> to vector<8x32xf32>
    %cst_29 = arith.constant dense<0.000000e+00> : vector<8x32xf32>
    %61 = tpu.matmul %59, %60, %cst_29 {dimension_numbers = #tpu.dot_dimension_numbers<[1], [0], [0], [1], [0, 0, 1, 1], [], []>} : vector<8x8xf32>, vector<8x32xf32>, vector<8x32xf32> -> vector<8x32xf32>
    %62 = arith.addf %41, %61 : vector<8x32xf32>
    %63 = vector.extract_strided_slice %38 {offsets = [0, 8], sizes = [8, 8], strides = [1, 1]} : vector<8x96xf32> to vector<8x8xf32>
    %cst_30 = arith.constant 0.353553385 : f32
    %64 = vector.broadcast %cst_30 : f32 to vector<8x8xf32>
    %65 = arith.mulf %63, %64 : vector<8x8xf32>
    %66 = vector.extract_strided_slice %38 {offsets = [0, 40], sizes = [8, 8], strides = [1, 1]} : vector<8x96xf32> to vector<8x8xf32>
    %67 = vector.extract_strided_slice %38 {offsets = [0, 72], sizes = [8, 8], strides = [1, 1]} : vector<8x96xf32> to vector<8x8xf32>
    %cst_31 = arith.constant dense<0.000000e+00> : vector<8x8xf32>
    %68 = tpu.matmul %65, %66, %cst_31 {dimension_numbers = #tpu.dot_dimension_numbers<[1], [1], [0], [0], [0, 0, 1, 0], [], []>} : vector<8x8xf32>, vector<8x8xf32>, vector<8x8xf32> -> vector<8x8xf32>
    %69 = arith.addf %68, %5 : vector<8x8xf32>
    %cst_32 = arith.constant dense<0xFF800000> : vector<8xf32>
    %70 = vector.multi_reduction <maximumf>, %69, %cst_32 [1] : vector<8x8xf32> to vector<8xf32>
    %71 = vector.shape_cast %70 : vector<8xf32> to vector<8x1xf32>
    %72 = vector.broadcast %71 : vector<8x1xf32> to vector<8x8xf32>
    %73 = arith.subf %69, %72 : vector<8x8xf32>
    %74 = math.exp %73 : vector<8x8xf32>
    %cst_33 = arith.constant dense<0.000000e+00> : vector<8xf32>
    %75 = vector.multi_reduction <add>, %74, %cst_33 [1] : vector<8x8xf32> to vector<8xf32>
    %76 = vector.shape_cast %75 : vector<8xf32> to vector<8x1xf32>
    %77 = tpu.reciprocal %76 {approx = true} : vector<8x1xf32> -> vector<8x1xf32>
    %78 = vector.broadcast %77 : vector<8x1xf32> to vector<8x8xf32>
    %79 = arith.mulf %74, %78 : vector<8x8xf32>
    %cst_34 = arith.constant dense<0.000000e+00> : vector<8x8xf32>
    %80 = tpu.matmul %79, %67, %cst_34 {dimension_numbers = #tpu.dot_dimension_numbers<[1], [0], [0], [1], [0, 0, 1, 1], [], []>} : vector<8x8xf32>, vector<8x8xf32>, vector<8x8xf32> -> vector<8x8xf32>
    %81 = vector.extract_strided_slice %40 {offsets = [8, 0], sizes = [8, 32], strides = [1, 1]} : vector<32x32xf32> to vector<8x32xf32>
    %cst_35 = arith.constant dense<0.000000e+00> : vector<8x32xf32>
    %82 = tpu.matmul %80, %81, %cst_35 {dimension_numbers = #tpu.dot_dimension_numbers<[1], [0], [0], [1], [0, 0, 1, 1], [], []>} : vector<8x8xf32>, vector<8x32xf32>, vector<8x32xf32> -> vector<8x32xf32>
    %83 = arith.addf %62, %82 : vector<8x32xf32>
    %84 = vector.extract_strided_slice %38 {offsets = [0, 16], sizes = [8, 8], strides = [1, 1]} : vector<8x96xf32> to vector<8x8xf32>
    %cst_36 = arith.constant 0.353553385 : f32
    %85 = vector.broadcast %cst_36 : f32 to vector<8x8xf32>
    %86 = arith.mulf %84, %85 : vector<8x8xf32>
    %87 = vector.extract_strided_slice %38 {offsets = [0, 48], sizes = [8, 8], strides = [1, 1]} : vector<8x96xf32> to vector<8x8xf32>
    %88 = vector.extract_strided_slice %38 {offsets = [0, 80], sizes = [8, 8], strides = [1, 1]} : vector<8x96xf32> to vector<8x8xf32>
    %cst_37 = arith.constant dense<0.000000e+00> : vector<8x8xf32>
    %89 = tpu.matmul %86, %87, %cst_37 {dimension_numbers = #tpu.dot_dimension_numbers<[1], [1], [0], [0], [0, 0, 1, 0], [], []>} : vector<8x8xf32>, vector<8x8xf32>, vector<8x8xf32> -> vector<8x8xf32>
    %90 = arith.addf %89, %5 : vector<8x8xf32>
    %cst_38 = arith.constant dense<0xFF800000> : vector<8xf32>
    %91 = vector.multi_reduction <maximumf>, %90, %cst_38 [1] : vector<8x8xf32> to vector<8xf32>
    %92 = vector.shape_cast %91 : vector<8xf32> to vector<8x1xf32>
    %93 = vector.broadcast %92 : vector<8x1xf32> to vector<8x8xf32>
    %94 = arith.subf %90, %93 : vector<8x8xf32>
    %95 = math.exp %94 : vector<8x8xf32>
    %cst_39 = arith.constant dense<0.000000e+00> : vector<8xf32>
    %96 = vector.multi_reduction <add>, %95, %cst_39 [1] : vector<8x8xf32> to vector<8xf32>
    %97 = vector.shape_cast %96 : vector<8xf32> to vector<8x1xf32>
    %98 = tpu.reciprocal %97 {approx = true} : vector<8x1xf32> -> vector<8x1xf32>
    %99 = vector.broadcast %98 : vector<8x1xf32> to vector<8x8xf32>
    %100 = arith.mulf %95, %99 : vector<8x8xf32>
    %cst_40 = arith.constant dense<0.000000e+00> : vector<8x8xf32>
    %101 = tpu.matmul %100, %88, %cst_40 {dimension_numbers = #tpu.dot_dimension_numbers<[1], [0], [0], [1], [0, 0, 1, 1], [], []>} : vector<8x8xf32>, vector<8x8xf32>, vector<8x8xf32> -> vector<8x8xf32>
    %102 = vector.extract_strided_slice %40 {offsets = [16, 0], sizes = [8, 32], strides = [1, 1]} : vector<32x32xf32> to vector<8x32xf32>
    %cst_41 = arith.constant dense<0.000000e+00> : vector<8x32xf32>
    %103 = tpu.matmul %101, %102, %cst_41 {dimension_numbers = #tpu.dot_dimension_numbers<[1], [0], [0], [1], [0, 0, 1, 1], [], []>} : vector<8x8xf32>, vector<8x32xf32>, vector<8x32xf32> -> vector<8x32xf32>
    %104 = arith.addf %83, %103 : vector<8x32xf32>
    %105 = vector.extract_strided_slice %38 {offsets = [0, 24], sizes = [8, 8], strides = [1, 1]} : vector<8x96xf32> to vector<8x8xf32>
    %cst_42 = arith.constant 0.353553385 : f32
    %106 = vector.broadcast %cst_42 : f32 to vector<8x8xf32>
    %107 = arith.mulf %105, %106 : vector<8x8xf32>
    %108 = vector.extract_strided_slice %38 {offsets = [0, 56], sizes = [8, 8], strides = [1, 1]} : vector<8x96xf32> to vector<8x8xf32>
    %109 = vector.extract_strided_slice %38 {offsets = [0, 88], sizes = [8, 8], strides = [1, 1]} : vector<8x96xf32> to vector<8x8xf32>
    %cst_43 = arith.constant dense<0.000000e+00> : vector<8x8xf32>
    %110 = tpu.matmul %107, %108, %cst_43 {dimension_numbers = #tpu.dot_dimension_numbers<[1], [1], [0], [0], [0, 0, 1, 0], [], []>} : vector<8x8xf32>, vector<8x8xf32>, vector<8x8xf32> -> vector<8x8xf32>
    %111 = arith.addf %110, %5 : vector<8x8xf32>
    %cst_44 = arith.constant dense<0xFF800000> : vector<8xf32>
    %112 = vector.multi_reduction <maximumf>, %111, %cst_44 [1] : vector<8x8xf32> to vector<8xf32>
    %113 = vector.shape_cast %112 : vector<8xf32> to vector<8x1xf32>
    %114 = vector.broadcast %113 : vector<8x1xf32> to vector<8x8xf32>
    %115 = arith.subf %111, %114 : vector<8x8xf32>
    %116 = math.exp %115 : vector<8x8xf32>
    %cst_45 = arith.constant dense<0.000000e+00> : vector<8xf32>
    %117 = vector.multi_reduction <add>, %116, %cst_45 [1] : vector<8x8xf32> to vector<8xf32>
    %118 = vector.shape_cast %117 : vector<8xf32> to vector<8x1xf32>
    %119 = tpu.reciprocal %118 {approx = true} : vector<8x1xf32> -> vector<8x1xf32>
    %120 = vector.broadcast %119 : vector<8x1xf32> to vector<8x8xf32>
    %121 = arith.mulf %116, %120 : vector<8x8xf32>
    %cst_46 = arith.constant dense<0.000000e+00> : vector<8x8xf32>
    %122 = tpu.matmul %121, %109, %cst_46 {dimension_numbers = #tpu.dot_dimension_numbers<[1], [0], [0], [1], [0, 0, 1, 1], [], []>} : vector<8x8xf32>, vector<8x8xf32>, vector<8x8xf32> -> vector<8x8xf32>
    %123 = vector.extract_strided_slice %40 {offsets = [24, 0], sizes = [8, 32], strides = [1, 1]} : vector<32x32xf32> to vector<8x32xf32>
    %cst_47 = arith.constant dense<0.000000e+00> : vector<8x32xf32>
    %124 = tpu.matmul %122, %123, %cst_47 {dimension_numbers = #tpu.dot_dimension_numbers<[1], [0], [0], [1], [0, 0, 1, 1], [], []>} : vector<8x8xf32>, vector<8x32xf32>, vector<8x32xf32> -> vector<8x32xf32>
    %125 = arith.addf %104, %124 : vector<8x32xf32>
    %c0_48 = arith.constant 0 : index
    %c0_49 = arith.constant 0 : index
    %c0_50 = arith.constant 0 : index
    %126 = vector.load %arg8[%c0_48, %c0_49, %c0_50] : memref<2x1x32xf32, #tpu.memory_space<vmem>>, vector<1x1x32xf32>
    %127 = vector.shape_cast %126 : vector<1x1x32xf32> to vector<1x32xf32>
    %128 = vector.broadcast %127 : vector<1x32xf32> to vector<8x32xf32>
    %129 = arith.addf %125, %128 : vector<8x32xf32>
    %130 = arith.addf %31, %129 : vector<8x32xf32>
    %c0_51 = arith.constant 0 : index
    %c0_52 = arith.constant 0 : index
    %c0_53 = arith.constant 0 : index
    %131 = vector.load %arg9[%c0_51, %c0_52, %c0_53] : memref<2x1x32xf32, #tpu.memory_space<vmem>>, vector<1x1x32xf32>
    %132 = vector.shape_cast %131 : vector<1x1x32xf32> to vector<1x32xf32>
    %c0_54 = arith.constant 0 : index
    %c0_55 = arith.constant 0 : index
    %c0_56 = arith.constant 0 : index
    %133 = vector.load %arg10[%c0_54, %c0_55, %c0_56] : memref<2x1x32xf32, #tpu.memory_space<vmem>>, vector<1x1x32xf32>
    %134 = vector.shape_cast %133 : vector<1x1x32xf32> to vector<1x32xf32>
    %cst_57 = arith.constant dense<0.000000e+00> : vector<8xf32>
    %135 = vector.multi_reduction <add>, %130, %cst_57 [1] : vector<8x32xf32> to vector<8xf32>
    %136 = vector.shape_cast %135 : vector<8xf32> to vector<8x1xf32>
    %cst_58 = arith.constant 3.200000e+01 : f32
    %137 = vector.broadcast %cst_58 : f32 to vector<8x1xf32>
    %138 = arith.divf %136, %137 : vector<8x1xf32>
    %139 = vector.broadcast %138 : vector<8x1xf32> to vector<8x32xf32>
    %140 = arith.subf %130, %139 : vector<8x32xf32>
    %141 = vector.broadcast %138 : vector<8x1xf32> to vector<8x32xf32>
    %142 = arith.subf %130, %141 : vector<8x32xf32>
    %143 = arith.mulf %140, %142 : vector<8x32xf32>
    %cst_59 = arith.constant dense<0.000000e+00> : vector<8xf32>
    %144 = vector.multi_reduction <add>, %143, %cst_59 [1] : vector<8x32xf32> to vector<8xf32>
    %145 = vector.shape_cast %144 : vector<8xf32> to vector<8x1xf32>
    %cst_60 = arith.constant 3.200000e+01 : f32
    %146 = vector.broadcast %cst_60 : f32 to vector<8x1xf32>
    %147 = arith.divf %145, %146 : vector<8x1xf32>
    %148 = vector.broadcast %138 : vector<8x1xf32> to vector<8x32xf32>
    %149 = arith.subf %130, %148 : vector<8x32xf32>
    %cst_61 = arith.constant 9.99999996E-13 : f32
    %150 = vector.broadcast %cst_61 : f32 to vector<8x1xf32>
    %151 = arith.addf %147, %150 : vector<8x1xf32>
    %152 = math.rsqrt %151 : vector<8x1xf32>
    %153 = vector.broadcast %152 : vector<8x1xf32> to vector<8x32xf32>
    %154 = arith.mulf %149, %153 : vector<8x32xf32>
    %155 = vector.broadcast %132 : vector<1x32xf32> to vector<8x32xf32>
    %156 = arith.mulf %154, %155 : vector<8x32xf32>
    %157 = vector.broadcast %134 : vector<1x32xf32> to vector<8x32xf32>
    %158 = arith.addf %156, %157 : vector<8x32xf32>
    %c0_62 = arith.constant 0 : index
    %c0_63 = arith.constant 0 : index
    %c0_64 = arith.constant 0 : index
    %159 = vector.load %arg11[%c0_62, %c0_63, %c0_64] : memref<2x32x64xf32, #tpu.memory_space<vmem>>, vector<1x32x64xf32>
    %160 = vector.shape_cast %159 : vector<1x32x64xf32> to vector<32x64xf32>
    %cst_65 = arith.constant dense<0.000000e+00> : vector<8x64xf32>
    %161 = tpu.matmul %158, %160, %cst_65 {dimension_numbers = #tpu.dot_dimension_numbers<[1], [0], [0], [1], [0, 0, 1, 1], [], []>} : vector<8x32xf32>, vector<32x64xf32>, vector<8x64xf32> -> vector<8x64xf32>
    %c0_66 = arith.constant 0 : index
    %c0_67 = arith.constant 0 : index
    %c0_68 = arith.constant 0 : index
    %162 = vector.load %arg12[%c0_66, %c0_67, %c0_68] : memref<2x1x64xf32, #tpu.memory_space<vmem>>, vector<1x1x64xf32>
    %163 = vector.shape_cast %162 : vector<1x1x64xf32> to vector<1x64xf32>
    %164 = vector.broadcast %163 : vector<1x64xf32> to vector<8x64xf32>
    %165 = arith.addf %161, %164 : vector<8x64xf32>
    %cst_69 = arith.constant 5.000000e-01 : f32
    %166 = vector.broadcast %cst_69 : f32 to vector<8x64xf32>
    %167 = arith.mulf %166, %165 : vector<8x64xf32>
    %cst_70 = arith.constant 4.471500e-02 : f32
    %168 = vector.broadcast %cst_70 : f32 to vector<8x64xf32>
    %169 = arith.mulf %168, %165 : vector<8x64xf32>
    %170 = arith.mulf %169, %165 : vector<8x64xf32>
    %171 = arith.mulf %170, %165 : vector<8x64xf32>
    %172 = arith.addf %165, %171 : vector<8x64xf32>
    %cst_71 = arith.constant 0.797884583 : f32
    %173 = vector.broadcast %cst_71 : f32 to vector<8x64xf32>
    %174 = arith.mulf %173, %172 : vector<8x64xf32>
    %175 = math.tanh %174 : vector<8x64xf32>
    %cst_72 = arith.constant 1.000000e+00 : f32
    %176 = vector.broadcast %cst_72 : f32 to vector<8x64xf32>
    %177 = arith.addf %176, %175 : vector<8x64xf32>
    %178 = arith.mulf %167, %177 : vector<8x64xf32>
    %c0_73 = arith.constant 0 : index
    %c0_74 = arith.constant 0 : index
    %c0_75 = arith.constant 0 : index
    %179 = vector.load %arg13[%c0_73, %c0_74, %c0_75] : memref<2x64x32xf32, #tpu.memory_space<vmem>>, vector<1x64x32xf32>
    %180 = vector.shape_cast %179 : vector<1x64x32xf32> to vector<64x32xf32>
    %cst_76 = arith.constant dense<0.000000e+00> : vector<8x32xf32>
    %181 = tpu.matmul %178, %180, %cst_76 {dimension_numbers = #tpu.dot_dimension_numbers<[1], [0], [0], [1], [0, 0, 1, 1], [], []>} : vector<8x64xf32>, vector<64x32xf32>, vector<8x32xf32> -> vector<8x32xf32>
    %c0_77 = arith.constant 0 : index
    %c0_78 = arith.constant 0 : index
    %c0_79 = arith.constant 0 : index
    %182 = vector.load %arg14[%c0_77, %c0_78, %c0_79] : memref<2x1x32xf32, #tpu.memory_space<vmem>>, vector<1x1x32xf32>
    %183 = vector.shape_cast %182 : vector<1x1x32xf32> to vector<1x32xf32>
    %184 = vector.broadcast %183 : vector<1x32xf32> to vector<8x32xf32>
    %185 = arith.addf %181, %184 : vector<8x32xf32>
    %186 = arith.addf %158, %185 : vector<8x32xf32>
    %c0_80 = arith.constant 0 : index
    %c0_81 = arith.constant 0 : index
    %c0_82 = arith.constant 0 : index
    %187 = vector.load %arg15[%c0_80, %c0_81, %c0_82] : memref<2x1x32xf32, #tpu.memory_space<vmem>>, vector<1x1x32xf32>
    %188 = vector.shape_cast %187 : vector<1x1x32xf32> to vector<1x32xf32>
    %c0_83 = arith.constant 0 : index
    %c0_84 = arith.constant 0 : index
    %c0_85 = arith.constant 0 : index
    %189 = vector.load %arg16[%c0_83, %c0_84, %c0_85] : memref<2x1x32xf32, #tpu.memory_space<vmem>>, vector<1x1x32xf32>
    %190 = vector.shape_cast %189 : vector<1x1x32xf32> to vector<1x32xf32>
    %cst_86 = arith.constant dense<0.000000e+00> : vector<8xf32>
    %191 = vector.multi_reduction <add>, %186, %cst_86 [1] : vector<8x32xf32> to vector<8xf32>
    %192 = vector.shape_cast %191 : vector<8xf32> to vector<8x1xf32>
    %cst_87 = arith.constant 3.200000e+01 : f32
    %193 = vector.broadcast %cst_87 : f32 to vector<8x1xf32>
    %194 = arith.divf %192, %193 : vector<8x1xf32>
    %195 = vector.broadcast %194 : vector<8x1xf32> to vector<8x32xf32>
    %196 = arith.subf %186, %195 : vector<8x32xf32>
    %197 = vector.broadcast %194 : vector<8x1xf32> to vector<8x32xf32>
    %198 = arith.subf %186, %197 : vector<8x32xf32>
    %199 = arith.mulf %196, %198 : vector<8x32xf32>
    %cst_88 = arith.constant dense<0.000000e+00> : vector<8xf32>
    %200 = vector.multi_reduction <add>, %199, %cst_88 [1] : vector<8x32xf32> to vector<8xf32>
    %201 = vector.shape_cast %200 : vector<8xf32> to vector<8x1xf32>
    %cst_89 = arith.constant 3.200000e+01 : f32
    %202 = vector.broadcast %cst_89 : f32 to vector<8x1xf32>
    %203 = arith.divf %201, %202 : vector<8x1xf32>
    %204 = vector.broadcast %194 : vector<8x1xf32> to vector<8x32xf32>
    %205 = arith.subf %186, %204 : vector<8x32xf32>
    %cst_90 = arith.constant 9.99999996E-13 : f32
    %206 = vector.broadcast %cst_90 : f32 to vector<8x1xf32>
    %207 = arith.addf %203, %206 : vector<8x1xf32>
    %208 = math.rsqrt %207 : vector<8x1xf32>
    %209 = vector.broadcast %208 : vector<8x1xf32> to vector<8x32xf32>
    %210 = arith.mulf %205, %209 : vector<8x32xf32>
    %211 = vector.broadcast %188 : vector<1x32xf32> to vector<8x32xf32>
    %212 = arith.mulf %210, %211 : vector<8x32xf32>
    %213 = vector.broadcast %190 : vector<1x32xf32> to vector<8x32xf32>
    %214 = arith.addf %212, %213 : vector<8x32xf32>
    %c1 = arith.constant 1 : index
    %c0_91 = arith.constant 0 : index
    %c0_92 = arith.constant 0 : index
    %215 = vector.load %arg5[%c1, %c0_91, %c0_92] : memref<2x32x96xf32, #tpu.memory_space<vmem>>, vector<1x32x96xf32>
    %216 = vector.shape_cast %215 : vector<1x32x96xf32> to vector<32x96xf32>
    %cst_93 = arith.constant dense<0.000000e+00> : vector<8x96xf32>
    %217 = tpu.matmul %214, %216, %cst_93 {dimension_numbers = #tpu.dot_dimension_numbers<[1], [0], [0], [1], [0, 0, 1, 1], [], []>} : vector<8x32xf32>, vector<32x96xf32>, vector<8x96xf32> -> vector<8x96xf32>
    %c1_94 = arith.constant 1 : index
    %c0_95 = arith.constant 0 : index
    %c0_96 = arith.constant 0 : index
    %218 = vector.load %arg6[%c1_94, %c0_95, %c0_96] : memref<2x1x96xf32, #tpu.memory_space<vmem>>, vector<1x1x96xf32>
    %219 = vector.shape_cast %218 : vector<1x1x96xf32> to vector<1x96xf32>
    %220 = vector.broadcast %219 : vector<1x96xf32> to vector<8x96xf32>
    %221 = arith.addf %217, %220 : vector<8x96xf32>
    %c1_97 = arith.constant 1 : index
    %c0_98 = arith.constant 0 : index
    %c0_99 = arith.constant 0 : index
    %222 = vector.load %arg7[%c1_97, %c0_98, %c0_99] : memref<2x32x32xf32, #tpu.memory_space<vmem>>, vector<1x32x32xf32>
    %223 = vector.shape_cast %222 : vector<1x32x32xf32> to vector<32x32xf32>
    %cst_100 = arith.constant 0.000000e+00 : f32
    %224 = vector.broadcast %cst_100 : f32 to vector<8x32xf32>
    %225 = vector.extract_strided_slice %221 {offsets = [0, 0], sizes = [8, 8], strides = [1, 1]} : vector<8x96xf32> to vector<8x8xf32>
    %cst_101 = arith.constant 0.353553385 : f32
    %226 = vector.broadcast %cst_101 : f32 to vector<8x8xf32>
    %227 = arith.mulf %225, %226 : vector<8x8xf32>
    %228 = vector.extract_strided_slice %221 {offsets = [0, 32], sizes = [8, 8], strides = [1, 1]} : vector<8x96xf32> to vector<8x8xf32>
    %229 = vector.extract_strided_slice %221 {offsets = [0, 64], sizes = [8, 8], strides = [1, 1]} : vector<8x96xf32> to vector<8x8xf32>
    %cst_102 = arith.constant dense<0.000000e+00> : vector<8x8xf32>
    %230 = tpu.matmul %227, %228, %cst_102 {dimension_numbers = #tpu.dot_dimension_numbers<[1], [1], [0], [0], [0, 0, 1, 0], [], []>} : vector<8x8xf32>, vector<8x8xf32>, vector<8x8xf32> -> vector<8x8xf32>
    %231 = arith.addf %230, %5 : vector<8x8xf32>
    %cst_103 = arith.constant dense<0xFF800000> : vector<8xf32>
    %232 = vector.multi_reduction <maximumf>, %231, %cst_103 [1] : vector<8x8xf32> to vector<8xf32>
    %233 = vector.shape_cast %232 : vector<8xf32> to vector<8x1xf32>
    %234 = vector.broadcast %233 : vector<8x1xf32> to vector<8x8xf32>
    %235 = arith.subf %231, %234 : vector<8x8xf32>
    %236 = math.exp %235 : vector<8x8xf32>
    %cst_104 = arith.constant dense<0.000000e+00> : vector<8xf32>
    %237 = vector.multi_reduction <add>, %236, %cst_104 [1] : vector<8x8xf32> to vector<8xf32>
    %238 = vector.shape_cast %237 : vector<8xf32> to vector<8x1xf32>
    %239 = tpu.reciprocal %238 {approx = true} : vector<8x1xf32> -> vector<8x1xf32>
    %240 = vector.broadcast %239 : vector<8x1xf32> to vector<8x8xf32>
    %241 = arith.mulf %236, %240 : vector<8x8xf32>
    %cst_105 = arith.constant dense<0.000000e+00> : vector<8x8xf32>
    %242 = tpu.matmul %241, %229, %cst_105 {dimension_numbers = #tpu.dot_dimension_numbers<[1], [0], [0], [1], [0, 0, 1, 1], [], []>} : vector<8x8xf32>, vector<8x8xf32>, vector<8x8xf32> -> vector<8x8xf32>
    %243 = vector.extract_strided_slice %223 {offsets = [0, 0], sizes = [8, 32], strides = [1, 1]} : vector<32x32xf32> to vector<8x32xf32>
    %cst_106 = arith.constant dense<0.000000e+00> : vector<8x32xf32>
    %244 = tpu.matmul %242, %243, %cst_106 {dimension_numbers = #tpu.dot_dimension_numbers<[1], [0], [0], [1], [0, 0, 1, 1], [], []>} : vector<8x8xf32>, vector<8x32xf32>, vector<8x32xf32> -> vector<8x32xf32>
    %245 = arith.addf %224, %244 : vector<8x32xf32>
    %246 = vector.extract_strided_slice %221 {offsets = [0, 8], sizes = [8, 8], strides = [1, 1]} : vector<8x96xf32> to vector<8x8xf32>
    %cst_107 = arith.constant 0.353553385 : f32
    %247 = vector.broadcast %cst_107 : f32 to vector<8x8xf32>
    %248 = arith.mulf %246, %247 : vector<8x8xf32>
    %249 = vector.extract_strided_slice %221 {offsets = [0, 40], sizes = [8, 8], strides = [1, 1]} : vector<8x96xf32> to vector<8x8xf32>
    %250 = vector.extract_strided_slice %221 {offsets = [0, 72], sizes = [8, 8], strides = [1, 1]} : vector<8x96xf32> to vector<8x8xf32>
    %cst_108 = arith.constant dense<0.000000e+00> : vector<8x8xf32>
    %251 = tpu.matmul %248, %249, %cst_108 {dimension_numbers = #tpu.dot_dimension_numbers<[1], [1], [0], [0], [0, 0, 1, 0], [], []>} : vector<8x8xf32>, vector<8x8xf32>, vector<8x8xf32> -> vector<8x8xf32>
    %252 = arith.addf %251, %5 : vector<8x8xf32>
    %cst_109 = arith.constant dense<0xFF800000> : vector<8xf32>
    %253 = vector.multi_reduction <maximumf>, %252, %cst_109 [1] : vector<8x8xf32> to vector<8xf32>
    %254 = vector.shape_cast %253 : vector<8xf32> to vector<8x1xf32>
    %255 = vector.broadcast %254 : vector<8x1xf32> to vector<8x8xf32>
    %256 = arith.subf %252, %255 : vector<8x8xf32>
    %257 = math.exp %256 : vector<8x8xf32>
    %cst_110 = arith.constant dense<0.000000e+00> : vector<8xf32>
    %258 = vector.multi_reduction <add>, %257, %cst_110 [1] : vector<8x8xf32> to vector<8xf32>
    %259 = vector.shape_cast %258 : vector<8xf32> to vector<8x1xf32>
    %260 = tpu.reciprocal %259 {approx = true} : vector<8x1xf32> -> vector<8x1xf32>
    %261 = vector.broadcast %260 : vector<8x1xf32> to vector<8x8xf32>
    %262 = arith.mulf %257, %261 : vector<8x8xf32>
    %cst_111 = arith.constant dense<0.000000e+00> : vector<8x8xf32>
    %263 = tpu.matmul %262, %250, %cst_111 {dimension_numbers = #tpu.dot_dimension_numbers<[1], [0], [0], [1], [0, 0, 1, 1], [], []>} : vector<8x8xf32>, vector<8x8xf32>, vector<8x8xf32> -> vector<8x8xf32>
    %264 = vector.extract_strided_slice %223 {offsets = [8, 0], sizes = [8, 32], strides = [1, 1]} : vector<32x32xf32> to vector<8x32xf32>
    %cst_112 = arith.constant dense<0.000000e+00> : vector<8x32xf32>
    %265 = tpu.matmul %263, %264, %cst_112 {dimension_numbers = #tpu.dot_dimension_numbers<[1], [0], [0], [1], [0, 0, 1, 1], [], []>} : vector<8x8xf32>, vector<8x32xf32>, vector<8x32xf32> -> vector<8x32xf32>
    %266 = arith.addf %245, %265 : vector<8x32xf32>
    %267 = vector.extract_strided_slice %221 {offsets = [0, 16], sizes = [8, 8], strides = [1, 1]} : vector<8x96xf32> to vector<8x8xf32>
    %cst_113 = arith.constant 0.353553385 : f32
    %268 = vector.broadcast %cst_113 : f32 to vector<8x8xf32>
    %269 = arith.mulf %267, %268 : vector<8x8xf32>
    %270 = vector.extract_strided_slice %221 {offsets = [0, 48], sizes = [8, 8], strides = [1, 1]} : vector<8x96xf32> to vector<8x8xf32>
    %271 = vector.extract_strided_slice %221 {offsets = [0, 80], sizes = [8, 8], strides = [1, 1]} : vector<8x96xf32> to vector<8x8xf32>
    %cst_114 = arith.constant dense<0.000000e+00> : vector<8x8xf32>
    %272 = tpu.matmul %269, %270, %cst_114 {dimension_numbers = #tpu.dot_dimension_numbers<[1], [1], [0], [0], [0, 0, 1, 0], [], []>} : vector<8x8xf32>, vector<8x8xf32>, vector<8x8xf32> -> vector<8x8xf32>
    %273 = arith.addf %272, %5 : vector<8x8xf32>
    %cst_115 = arith.constant dense<0xFF800000> : vector<8xf32>
    %274 = vector.multi_reduction <maximumf>, %273, %cst_115 [1] : vector<8x8xf32> to vector<8xf32>
    %275 = vector.shape_cast %274 : vector<8xf32> to vector<8x1xf32>
    %276 = vector.broadcast %275 : vector<8x1xf32> to vector<8x8xf32>
    %277 = arith.subf %273, %276 : vector<8x8xf32>
    %278 = math.exp %277 : vector<8x8xf32>
    %cst_116 = arith.constant dense<0.000000e+00> : vector<8xf32>
    %279 = vector.multi_reduction <add>, %278, %cst_116 [1] : vector<8x8xf32> to vector<8xf32>
    %280 = vector.shape_cast %279 : vector<8xf32> to vector<8x1xf32>
    %281 = tpu.reciprocal %280 {approx = true} : vector<8x1xf32> -> vector<8x1xf32>
    %282 = vector.broadcast %281 : vector<8x1xf32> to vector<8x8xf32>
    %283 = arith.mulf %278, %282 : vector<8x8xf32>
    %cst_117 = arith.constant dense<0.000000e+00> : vector<8x8xf32>
    %284 = tpu.matmul %283, %271, %cst_117 {dimension_numbers = #tpu.dot_dimension_numbers<[1], [0], [0], [1], [0, 0, 1, 1], [], []>} : vector<8x8xf32>, vector<8x8xf32>, vector<8x8xf32> -> vector<8x8xf32>
    %285 = vector.extract_strided_slice %223 {offsets = [16, 0], sizes = [8, 32], strides = [1, 1]} : vector<32x32xf32> to vector<8x32xf32>
    %cst_118 = arith.constant dense<0.000000e+00> : vector<8x32xf32>
    %286 = tpu.matmul %284, %285, %cst_118 {dimension_numbers = #tpu.dot_dimension_numbers<[1], [0], [0], [1], [0, 0, 1, 1], [], []>} : vector<8x8xf32>, vector<8x32xf32>, vector<8x32xf32> -> vector<8x32xf32>
    %287 = arith.addf %266, %286 : vector<8x32xf32>
    %288 = vector.extract_strided_slice %221 {offsets = [0, 24], sizes = [8, 8], strides = [1, 1]} : vector<8x96xf32> to vector<8x8xf32>
    %cst_119 = arith.constant 0.353553385 : f32
    %289 = vector.broadcast %cst_119 : f32 to vector<8x8xf32>
    %290 = arith.mulf %288, %289 : vector<8x8xf32>
    %291 = vector.extract_strided_slice %221 {offsets = [0, 56], sizes = [8, 8], strides = [1, 1]} : vector<8x96xf32> to vector<8x8xf32>
    %292 = vector.extract_strided_slice %221 {offsets = [0, 88], sizes = [8, 8], strides = [1, 1]} : vector<8x96xf32> to vector<8x8xf32>
    %cst_120 = arith.constant dense<0.000000e+00> : vector<8x8xf32>
    %293 = tpu.matmul %290, %291, %cst_120 {dimension_numbers = #tpu.dot_dimension_numbers<[1], [1], [0], [0], [0, 0, 1, 0], [], []>} : vector<8x8xf32>, vector<8x8xf32>, vector<8x8xf32> -> vector<8x8xf32>
    %294 = arith.addf %293, %5 : vector<8x8xf32>
    %cst_121 = arith.constant dense<0xFF800000> : vector<8xf32>
    %295 = vector.multi_reduction <maximumf>, %294, %cst_121 [1] : vector<8x8xf32> to vector<8xf32>
    %296 = vector.shape_cast %295 : vector<8xf32> to vector<8x1xf32>
    %297 = vector.broadcast %296 : vector<8x1xf32> to vector<8x8xf32>
    %298 = arith.subf %294, %297 : vector<8x8xf32>
    %299 = math.exp %298 : vector<8x8xf32>
    %cst_122 = arith.constant dense<0.000000e+00> : vector<8xf32>
    %300 = vector.multi_reduction <add>, %299, %cst_122 [1] : vector<8x8xf32> to vector<8xf32>
    %301 = vector.shape_cast %300 : vector<8xf32> to vector<8x1xf32>
    %302 = tpu.reciprocal %301 {approx = true} : vector<8x1xf32> -> vector<8x1xf32>
    %303 = vector.broadcast %302 : vector<8x1xf32> to vector<8x8xf32>
    %304 = arith.mulf %299, %303 : vector<8x8xf32>
    %cst_123 = arith.constant dense<0.000000e+00> : vector<8x8xf32>
    %305 = tpu.matmul %304, %292, %cst_123 {dimension_numbers = #tpu.dot_dimension_numbers<[1], [0], [0], [1], [0, 0, 1, 1], [], []>} : vector<8x8xf32>, vector<8x8xf32>, vector<8x8xf32> -> vector<8x8xf32>
    %306 = vector.extract_strided_slice %223 {offsets = [24, 0], sizes = [8, 32], strides = [1, 1]} : vector<32x32xf32> to vector<8x32xf32>
    %cst_124 = arith.constant dense<0.000000e+00> : vector<8x32xf32>
    %307 = tpu.matmul %305, %306, %cst_124 {dimension_numbers = #tpu.dot_dimension_numbers<[1], [0], [0], [1], [0, 0, 1, 1], [], []>} : vector<8x8xf32>, vector<8x32xf32>, vector<8x32xf32> -> vector<8x32xf32>
    %308 = arith.addf %287, %307 : vector<8x32xf32>
    %c1_125 = arith.constant 1 : index
    %c0_126 = arith.constant 0 : index
    %c0_127 = arith.constant 0 : index
    %309 = vector.load %arg8[%c1_125, %c0_126, %c0_127] : memref<2x1x32xf32, #tpu.memory_space<vmem>>, vector<1x1x32xf32>
    %310 = vector.shape_cast %309 : vector<1x1x32xf32> to vector<1x32xf32>
    %311 = vector.broadcast %310 : vector<1x32xf32> to vector<8x32xf32>
    %312 = arith.addf %308, %311 : vector<8x32xf32>
    %313 = arith.addf %214, %312 : vector<8x32xf32>
    %c1_128 = arith.constant 1 : index
    %c0_129 = arith.constant 0 : index
    %c0_130 = arith.constant 0 : index
    %314 = vector.load %arg9[%c1_128, %c0_129, %c0_130] : memref<2x1x32xf32, #tpu.memory_space<vmem>>, vector<1x1x32xf32>
    %315 = vector.shape_cast %314 : vector<1x1x32xf32> to vector<1x32xf32>
    %c1_131 = arith.constant 1 : index
    %c0_132 = arith.constant 0 : index
    %c0_133 = arith.constant 0 : index
    %316 = vector.load %arg10[%c1_131, %c0_132, %c0_133] : memref<2x1x32xf32, #tpu.memory_space<vmem>>, vector<1x1x32xf32>
    %317 = vector.shape_cast %316 : vector<1x1x32xf32> to vector<1x32xf32>
    %cst_134 = arith.constant dense<0.000000e+00> : vector<8xf32>
    %318 = vector.multi_reduction <add>, %313, %cst_134 [1] : vector<8x32xf32> to vector<8xf32>
    %319 = vector.shape_cast %318 : vector<8xf32> to vector<8x1xf32>
    %cst_135 = arith.constant 3.200000e+01 : f32
    %320 = vector.broadcast %cst_135 : f32 to vector<8x1xf32>
    %321 = arith.divf %319, %320 : vector<8x1xf32>
    %322 = vector.broadcast %321 : vector<8x1xf32> to vector<8x32xf32>
    %323 = arith.subf %313, %322 : vector<8x32xf32>
    %324 = vector.broadcast %321 : vector<8x1xf32> to vector<8x32xf32>
    %325 = arith.subf %313, %324 : vector<8x32xf32>
    %326 = arith.mulf %323, %325 : vector<8x32xf32>
    %cst_136 = arith.constant dense<0.000000e+00> : vector<8xf32>
    %327 = vector.multi_reduction <add>, %326, %cst_136 [1] : vector<8x32xf32> to vector<8xf32>
    %328 = vector.shape_cast %327 : vector<8xf32> to vector<8x1xf32>
    %cst_137 = arith.constant 3.200000e+01 : f32
    %329 = vector.broadcast %cst_137 : f32 to vector<8x1xf32>
    %330 = arith.divf %328, %329 : vector<8x1xf32>
    %331 = vector.broadcast %321 : vector<8x1xf32> to vector<8x32xf32>
    %332 = arith.subf %313, %331 : vector<8x32xf32>
    %cst_138 = arith.constant 9.99999996E-13 : f32
    %333 = vector.broadcast %cst_138 : f32 to vector<8x1xf32>
    %334 = arith.addf %330, %333 : vector<8x1xf32>
    %335 = math.rsqrt %334 : vector<8x1xf32>
    %336 = vector.broadcast %335 : vector<8x1xf32> to vector<8x32xf32>
    %337 = arith.mulf %332, %336 : vector<8x32xf32>
    %338 = vector.broadcast %315 : vector<1x32xf32> to vector<8x32xf32>
    %339 = arith.mulf %337, %338 : vector<8x32xf32>
    %340 = vector.broadcast %317 : vector<1x32xf32> to vector<8x32xf32>
    %341 = arith.addf %339, %340 : vector<8x32xf32>
    %c1_139 = arith.constant 1 : index
    %c0_140 = arith.constant 0 : index
    %c0_141 = arith.constant 0 : index
    %342 = vector.load %arg11[%c1_139, %c0_140, %c0_141] : memref<2x32x64xf32, #tpu.memory_space<vmem>>, vector<1x32x64xf32>
    %343 = vector.shape_cast %342 : vector<1x32x64xf32> to vector<32x64xf32>
    %cst_142 = arith.constant dense<0.000000e+00> : vector<8x64xf32>
    %344 = tpu.matmul %341, %343, %cst_142 {dimension_numbers = #tpu.dot_dimension_numbers<[1], [0], [0], [1], [0, 0, 1, 1], [], []>} : vector<8x32xf32>, vector<32x64xf32>, vector<8x64xf32> -> vector<8x64xf32>
    %c1_143 = arith.constant 1 : index
    %c0_144 = arith.constant 0 : index
    %c0_145 = arith.constant 0 : index
    %345 = vector.load %arg12[%c1_143, %c0_144, %c0_145] : memref<2x1x64xf32, #tpu.memory_space<vmem>>, vector<1x1x64xf32>
    %346 = vector.shape_cast %345 : vector<1x1x64xf32> to vector<1x64xf32>
    %347 = vector.broadcast %346 : vector<1x64xf32> to vector<8x64xf32>
    %348 = arith.addf %344, %347 : vector<8x64xf32>
    %cst_146 = arith.constant 5.000000e-01 : f32
    %349 = vector.broadcast %cst_146 : f32 to vector<8x64xf32>
    %350 = arith.mulf %349, %348 : vector<8x64xf32>
    %cst_147 = arith.constant 4.471500e-02 : f32
    %351 = vector.broadcast %cst_147 : f32 to vector<8x64xf32>
    %352 = arith.mulf %351, %348 : vector<8x64xf32>
    %353 = arith.mulf %352, %348 : vector<8x64xf32>
    %354 = arith.mulf %353, %348 : vector<8x64xf32>
    %355 = arith.addf %348, %354 : vector<8x64xf32>
    %cst_148 = arith.constant 0.797884583 : f32
    %356 = vector.broadcast %cst_148 : f32 to vector<8x64xf32>
    %357 = arith.mulf %356, %355 : vector<8x64xf32>
    %358 = math.tanh %357 : vector<8x64xf32>
    %cst_149 = arith.constant 1.000000e+00 : f32
    %359 = vector.broadcast %cst_149 : f32 to vector<8x64xf32>
    %360 = arith.addf %359, %358 : vector<8x64xf32>
    %361 = arith.mulf %350, %360 : vector<8x64xf32>
    %c1_150 = arith.constant 1 : index
    %c0_151 = arith.constant 0 : index
    %c0_152 = arith.constant 0 : index
    %362 = vector.load %arg13[%c1_150, %c0_151, %c0_152] : memref<2x64x32xf32, #tpu.memory_space<vmem>>, vector<1x64x32xf32>
    %363 = vector.shape_cast %362 : vector<1x64x32xf32> to vector<64x32xf32>
    %cst_153 = arith.constant dense<0.000000e+00> : vector<8x32xf32>
    %364 = tpu.matmul %361, %363, %cst_153 {dimension_numbers = #tpu.dot_dimension_numbers<[1], [0], [0], [1], [0, 0, 1, 1], [], []>} : vector<8x64xf32>, vector<64x32xf32>, vector<8x32xf32> -> vector<8x32xf32>
    %c1_154 = arith.constant 1 : index
    %c0_155 = arith.constant 0 : index
    %c0_156 = arith.constant 0 : index
    %365 = vector.load %arg14[%c1_154, %c0_155, %c0_156] : memref<2x1x32xf32, #tpu.memory_space<vmem>>, vector<1x1x32xf32>
    %366 = vector.shape_cast %365 : vector<1x1x32xf32> to vector<1x32xf32>
    %367 = vector.broadcast %366 : vector<1x32xf32> to vector<8x32xf32>
    %368 = arith.addf %364, %367 : vector<8x32xf32>
    %369 = arith.addf %341, %368 : vector<8x32xf32>
    %c1_157 = arith.constant 1 : index
    %c0_158 = arith.constant 0 : index
    %c0_159 = arith.constant 0 : index
    %370 = vector.load %arg15[%c1_157, %c0_158, %c0_159] : memref<2x1x32xf32, #tpu.memory_space<vmem>>, vector<1x1x32xf32>
    %371 = vector.shape_cast %370 : vector<1x1x32xf32> to vector<1x32xf32>
    %c1_160 = arith.constant 1 : index
    %c0_161 = arith.constant 0 : index
    %c0_162 = arith.constant 0 : index
    %372 = vector.load %arg16[%c1_160, %c0_161, %c0_162] : memref<2x1x32xf32, #tpu.memory_space<vmem>>, vector<1x1x32xf32>
    %373 = vector.shape_cast %372 : vector<1x1x32xf32> to vector<1x32xf32>
    %cst_163 = arith.constant dense<0.000000e+00> : vector<8xf32>
    %374 = vector.multi_reduction <add>, %369, %cst_163 [1] : vector<8x32xf32> to vector<8xf32>
    %375 = vector.shape_cast %374 : vector<8xf32> to vector<8x1xf32>
    %cst_164 = arith.constant 3.200000e+01 : f32
    %376 = vector.broadcast %cst_164 : f32 to vector<8x1xf32>
    %377 = arith.divf %375, %376 : vector<8x1xf32>
    %378 = vector.broadcast %377 : vector<8x1xf32> to vector<8x32xf32>
    %379 = arith.subf %369, %378 : vector<8x32xf32>
    %380 = vector.broadcast %377 : vector<8x1xf32> to vector<8x32xf32>
    %381 = arith.subf %369, %380 : vector<8x32xf32>
    %382 = arith.mulf %379, %381 : vector<8x32xf32>
    %cst_165 = arith.constant dense<0.000000e+00> : vector<8xf32>
    %383 = vector.multi_reduction <add>, %382, %cst_165 [1] : vector<8x32xf32> to vector<8xf32>
    %384 = vector.shape_cast %383 : vector<8xf32> to vector<8x1xf32>
    %cst_166 = arith.constant 3.200000e+01 : f32
    %385 = vector.broadcast %cst_166 : f32 to vector<8x1xf32>
    %386 = arith.divf %384, %385 : vector<8x1xf32>
    %387 = vector.broadcast %377 : vector<8x1xf32> to vector<8x32xf32>
    %388 = arith.subf %369, %387 : vector<8x32xf32>
    %cst_167 = arith.constant 9.99999996E-13 : f32
    %389 = vector.broadcast %cst_167 : f32 to vector<8x1xf32>
    %390 = arith.addf %386, %389 : vector<8x1xf32>
    %391 = math.rsqrt %390 : vector<8x1xf32>
    %392 = vector.broadcast %391 : vector<8x1xf32> to vector<8x32xf32>
    %393 = arith.mulf %388, %392 : vector<8x32xf32>
    %394 = vector.broadcast %371 : vector<1x32xf32> to vector<8x32xf32>
    %395 = arith.mulf %393, %394 : vector<8x32xf32>
    %396 = vector.broadcast %373 : vector<1x32xf32> to vector<8x32xf32>
    %397 = arith.addf %395, %396 : vector<8x32xf32>
    %398 = vector.extract_strided_slice %397 {offsets = [0, 0], sizes = [1, 32], strides = [1, 1]} : vector<8x32xf32> to vector<1x32xf32>
    %c0_168 = arith.constant 0 : index
    %c0_169 = arith.constant 0 : index
    %399 = vector.load %arg17[%c0_168, %c0_169] : memref<32x128xf32, #tpu.memory_space<vmem>>, vector<32x128xf32>
    %cst_170 = arith.constant dense<0.000000e+00> : vector<1x128xf32>
    %400 = tpu.matmul %398, %399, %cst_170 {dimension_numbers = #tpu.dot_dimension_numbers<[1], [0], [0], [1], [0, 0, 1, 1], [], []>} : vector<1x32xf32>, vector<32x128xf32>, vector<1x128xf32> -> vector<1x128xf32>
    %c0_171 = arith.constant 0 : index
    %c0_172 = arith.constant 0 : index
    %401 = vector.load %arg18[%c0_171, %c0_172] : memref<1x128xf32, #tpu.memory_space<vmem>>, vector<1x128xf32>
    %402 = arith.addf %400, %401 : vector<1x128xf32>
    %403 = math.tanh %402 : vector<1x128xf32>
    %c0_173 = arith.constant 0 : index
    %c0_174 = arith.constant 0 : index
    %c0_175 = arith.constant 0 : index
    %404 = vector.load %arg21[%c0_173, %c0_174, %c0_175] : memref<1x1x128xf32, #tpu.memory_space<vmem>>, vector<1x1x128xf32>
    %405 = vector.shape_cast %404 : vector<1x1x128xf32> to vector<1x128xf32>
    %406 = vector.shape_cast %403 : vector<1x128xf32> to vector<1x1x128xf32>
    tpu.vector_store %arg21[%c0_173, %c0_174, %c0_175], %406 {strides = array<i32>} : memref<1x1x128xf32, #tpu.memory_space<vmem>>, vector<1x1x128xf32>,
    %c0_176 = arith.constant 0 : index
    %c0_177 = arith.constant 0 : index
    %407 = vector.load %arg19[%c0_176, %c0_177] : memref<128x128xf32, #tpu.memory_space<vmem>>, vector<128x128xf32>
    %cst_178 = arith.constant dense<0.000000e+00> : vector<1x128xf32>
    %408 = tpu.matmul %403, %407, %cst_178 {dimension_numbers = #tpu.dot_dimension_numbers<[1], [0], [0], [1], [0, 0, 1, 1], [], []>} : vector<1x128xf32>, vector<128x128xf32>, vector<1x128xf32> -> vector<1x128xf32>
    %c0_179 = arith.constant 0 : index
    %c0_180 = arith.constant 0 : index
    %409 = vector.load %arg20[%c0_179, %c0_180] : memref<1x128xf32, #tpu.memory_space<vmem>>, vector<1x128xf32>
    %410 = arith.addf %408, %409 : vector<1x128xf32>
    %c0_181 = arith.constant 0 : index
    %c0_182 = arith.constant 0 : index
    %c0_183 = arith.constant 0 : index
    %411 = vector.load %arg22[%c0_181, %c0_182, %c0_183] : memref<1x1x128xf32, #tpu.memory_space<vmem>>, vector<1x1x128xf32>
    %412 = vector.shape_cast %411 : vector<1x1x128xf32> to vector<1x128xf32>
    %413 = vector.shape_cast %410 : vector<1x128xf32> to vector<1x1x128xf32>
    tpu.vector_store %arg22[%c0_181, %c0_182, %c0_183], %413 {strides = array<i32>} : memref<1x1x128xf32, #tpu.memory_space<vmem>>, vector<1x1x128xf32>,
    return
  }
  func.func @transform_0(%arg0: i32) -> (i32, i32, i32) {
    %c0_i32 = arith.constant 0 : i32
    %c0_i32_0 = arith.constant 0 : i32
    %c0_i32_1 = arith.constant 0 : i32
    return %arg0, %c0_i32, %c0_i32_0 : i32, i32, i32
  }
  func.func @transform_1(%arg0: i32) -> (i32, i32, i32) {
    %c0_i32 = arith.constant 0 : i32
    %c0_i32_0 = arith.constant 0 : i32
    %c0_i32_1 = arith.constant 0 : i32
    return %arg0, %c0_i32, %c0_i32_0 : i32, i32, i32
  }
  func.func @transform_2(%arg0: i32) -> (i32, i32) {
    %c0_i32 = arith.constant 0 : i32
    %c0_i32_0 = arith.constant 0 : i32
    %c0_i32_1 = arith.constant 0 : i32
    return %c0_i32, %c0_i32_0 : i32, i32
  }
  func.func @transform_3(%arg0: i32) -> (i32, i32) {
    %c0_i32 = arith.constant 0 : i32
    %c0_i32_0 = arith.constant 0 : i32
    %c0_i32_1 = arith.constant 0 : i32
    return %c0_i32, %c0_i32_0 : i32, i32
  }
  func.func @transform_4(%arg0: i32) -> (i32, i32, i32) {
    %c0_i32 = arith.constant 0 : i32
    %c0_i32_0 = arith.constant 0 : i32
    %c0_i32_1 = arith.constant 0 : i32
    %c0_i32_2 = arith.constant 0 : i32
    return %c0_i32, %c0_i32_0, %c0_i32_1 : i32, i32, i32
  }
  func.func @transform_5(%arg0: i32) -> (i32, i32, i32) {
    %c0_i32 = arith.constant 0 : i32
    %c0_i32_0 = arith.constant 0 : i32
    %c0_i32_1 = arith.constant 0 : i32
    %c0_i32_2 = arith.constant 0 : i32
    return %c0_i32, %c0_i32_0, %c0_i32_1 : i32, i32, i32
  }
  func.func @transform_6(%arg0: i32) -> (i32, i32, i32) {
    %c0_i32 = arith.constant 0 : i32
    %c0_i32_0 = arith.constant 0 : i32
    %c0_i32_1 = arith.constant 0 : i32
    %c0_i32_2 = arith.constant 0 : i32
    return %c0_i32, %c0_i32_0, %c0_i32_1 : i32, i32, i32
  }
  func.func @transform_7(%arg0: i32) -> (i32, i32, i32) {
    %c0_i32 = arith.constant 0 : i32
    %c0_i32_0 = arith.constant 0 : i32
    %c0_i32_1 = arith.constant 0 : i32
    %c0_i32_2 = arith.constant 0 : i32
    return %c0_i32, %c0_i32_0, %c0_i32_1 : i32, i32, i32
  }
  func.func @transform_8(%arg0: i32) -> (i32, i32, i32) {
    %c0_i32 = arith.constant 0 : i32
    %c0_i32_0 = arith.constant 0 : i32
    %c0_i32_1 = arith.constant 0 : i32
    %c0_i32_2 = arith.constant 0 : i32
    return %c0_i32, %c0_i32_0, %c0_i32_1 : i32, i32, i32
  }
  func.func @transform_9(%arg0: i32) -> (i32, i32, i32) {
    %c0_i32 = arith.constant 0 : i32
    %c0_i32_0 = arith.constant 0 : i32
    %c0_i32_1 = arith.constant 0 : i32
    %c0_i32_2 = arith.constant 0 : i32
    return %c0_i32, %c0_i32_0, %c0_i32_1 : i32, i32, i32
  }
  func.func @transform_10(%arg0: i32) -> (i32, i32, i32) {
    %c0_i32 = arith.constant 0 : i32
    %c0_i32_0 = arith.constant 0 : i32
    %c0_i32_1 = arith.constant 0 : i32
    %c0_i32_2 = arith.constant 0 : i32
    return %c0_i32, %c0_i32_0, %c0_i32_1 : i32, i32, i32
  }
  func.func @transform_11(%arg0: i32) -> (i32, i32, i32) {
    %c0_i32 = arith.constant 0 : i32
    %c0_i32_0 = arith.constant 0 : i32
    %c0_i32_1 = arith.constant 0 : i32
    %c0_i32_2 = arith.constant 0 : i32
    return %c0_i32, %c0_i32_0, %c0_i32_1 : i32, i32, i32
  }
  func.func @transform_12(%arg0: i32) -> (i32, i32, i32) {
    %c0_i32 = arith.constant 0 : i32
    %c0_i32_0 = arith.constant 0 : i32
    %c0_i32_1 = arith.constant 0 : i32
    %c0_i32_2 = arith.constant 0 : i32
    return %c0_i32, %c0_i32_0, %c0_i32_1 : i32, i32, i32
  }
  func.func @transform_13(%arg0: i32) -> (i32, i32, i32) {
    %c0_i32 = arith.constant 0 : i32
    %c0_i32_0 = arith.constant 0 : i32
    %c0_i32_1 = arith.constant 0 : i32
    %c0_i32_2 = arith.constant 0 : i32
    return %c0_i32, %c0_i32_0, %c0_i32_1 : i32, i32, i32
  }
  func.func @transform_14(%arg0: i32) -> (i32, i32, i32) {
    %c0_i32 = arith.constant 0 : i32
    %c0_i32_0 = arith.constant 0 : i32
    %c0_i32_1 = arith.constant 0 : i32
    %c0_i32_2 = arith.constant 0 : i32
    return %c0_i32, %c0_i32_0, %c0_i32_1 : i32, i32, i32
  }
  func.func @transform_15(%arg0: i32) -> (i32, i32, i32) {
    %c0_i32 = arith.constant 0 : i32
    %c0_i32_0 = arith.constant 0 : i32
    %c0_i32_1 = arith.constant 0 : i32
    %c0_i32_2 = arith.constant 0 : i32
    return %c0_i32, %c0_i32_0, %c0_i32_1 : i32, i32, i32
  }
  func.func @transform_16(%arg0: i32) -> (i32, i32) {
    %c0_i32 = arith.constant 0 : i32
    %c0_i32_0 = arith.constant 0 : i32
    %c0_i32_1 = arith.constant 0 : i32
    return %c0_i32, %c0_i32_0 : i32, i32
  }
  func.func @transform_17(%arg0: i32) -> (i32, i32) {
    %c0_i32 = arith.constant 0 : i32
    %c0_i32_0 = arith.constant 0 : i32
    %c0_i32_1 = arith.constant 0 : i32
    return %c0_i32, %c0_i32_0 : i32, i32
  }
  func.func @transform_18(%arg0: i32) -> (i32, i32) {
    %c0_i32 = arith.constant 0 : i32
    %c0_i32_0 = arith.constant 0 : i32
    %c0_i32_1 = arith.constant 0 : i32
    return %c0_i32, %c0_i32_0 : i32, i32
  }
  func.func @transform_19(%arg0: i32) -> (i32, i32) {
    %c0_i32 = arith.constant 0 : i32
    %c0_i32_0 = arith.constant 0 : i32
    %c0_i32_1 = arith.constant 0 : i32
    return %c0_i32, %c0_i32_0 : i32, i32
  }
  func.func @transform_20(%arg0: i32) -> (i32, i32, i32) {
    %c0_i32 = arith.constant 0 : i32
    %c0_i32_0 = arith.constant 0 : i32
    %c0_i32_1 = arith.constant 0 : i32
    return %arg0, %c0_i32, %c0_i32_0 : i32, i32, i32
  }
  func.func @transform_21(%arg0: i32) -> (i32, i32, i32) {
    %c0_i32 = arith.constant 0 : i32
    %c0_i32_0 = arith.constant 0 : i32
    %c0_i32_1 = arith.constant 0 : i32
    return %arg0, %c0_i32, %c0_i32_0 : i32, i32, i32
  }
}

</mosaic_0001>

<bundles_post_ra>
// kernel: bert_spc_forward.1
= control target key start
LH: loop header
LB: loop body
LE: loop exit
PB: predicated region body
PF: predicated region fallthrough
CT: control target
= control target key end

     0   :  { %s5091_s0 = inlined_call_operand.vmem [shape: f32[2,8,32], index: 0, kind: input, shape index: {}]   ;;  %s5092_s1 = inlined_call_operand.vmem [shape: f32[2,1,8], index: 1, kind: input, shape index: {}]   ;;  %s5093_s2 = inlined_call_operand.vmem [shape: f32[1,32], index: 2, kind: input, shape index: {}]   ;;  %s5094_s3 = inlined_call_operand.vmem [shape: f32[1,32], index: 3, kind: input, shape index: {}]   ;;  %s5095_s4 = inlined_call_operand.vmem [shape: f32[2,32,96], index: 4, kind: input, shape index: {}]   ;;  %s5096_s5 = inlined_call_operand.vmem [shape: f32[2,1,96], index: 5, kind: input, shape index: {}]   ;;  %s5097_s6 = inlined_call_operand.vmem [shape: f32[2,32,32], index: 6, kind: input, shape index: {}]   ;;  %s5098_s7 = inlined_call_operand.vmem [shape: f32[2,1,32], index: 7, kind: input, shape index: {}]   ;;  %s5099_s8 = inlined_call_operand.vmem [shape: f32[2,1,32], index: 8, kind: input, shape index: {}]   ;;  %s5100_s9 = inlined_call_operand.vmem [shape: f32[2,1,32], index: 9, kind: input, shape index: {}]   ;;  %s5101_s10 = inlined_call_operand.vmem [shape: f32[2,32,64], index: 10, kind: input, shape index: {}]   ;;  %s5102_s11 = inlined_call_operand.vmem [shape: f32[2,1,64], index: 11, kind: input, shape index: {}]   ;;  %s5103_s12 = inlined_call_operand.vmem [shape: f32[2,64,32], index: 12, kind: input, shape index: {}]   ;;  %s5104_s13 = inlined_call_operand.vmem [shape: f32[2,1,32], index: 13, kind: input, shape index: {}]   ;;  %s5105_s14 = inlined_call_operand.vmem [shape: f32[2,1,32], index: 14, kind: input, shape index: {}]   ;;  %s5106_s15 = inlined_call_operand.vmem [shape: f32[2,1,32], index: 15, kind: input, shape index: {}]   ;;  %s5107_s16 = inlined_call_operand.vmem [shape: f32[32,128], index: 16, kind: input, shape index: {}]   ;;  %s5108_s17 = inlined_call_operand.vmem [shape: f32[1,128], index: 17, kind: input, shape index: {}]   ;;  %s5109_s18 = inlined_call_operand.vmem [shape: f32[128,128], index: 18, kind: input, shape index: {}]   ;;  %s5110_s19 = inlined_call_operand.vmem [shape: f32[1,128], index: 19, kind: input, shape index: {}]   ;;  %s5111_s20 = inlined_call_operand.hbm [shape: f32[2,1,128], index: 20, kind: output, shape index: {0}]   ;;  %s5112_s21 = inlined_call_operand.hbm [shape: f32[2,1,128], index: 21, kind: output, shape index: {1}]  }
   0x1   :  { %5133 = sst [smem:[#allocation13_spill]] %s5091_s0 }
   0x2   :  { %5134 = sst [smem:[#allocation14_spill]] %s5092_s1 }
   0x3   :  { %5135 = sst [smem:[#allocation15_spill]] %s5093_s2 }
   0x4   :  { %5136 = sst [smem:[#allocation16_spill]] %s5094_s3 }
   0x5   :  { %5137 = sst [smem:[#allocation17_spill]] %s5095_s4 }
   0x6   :  { %5138 = sst [smem:[#allocation18_spill]] %s5096_s5 }
   0x7   :  { %5139 = sst [smem:[#allocation19_spill]] %s5097_s6 }
   0x8   :  { %5140 = sst [smem:[#allocation20_spill]] %s5098_s7 }
   0x9   :  { %27 = vsyncpa [#allocation3], 0 }
   0xa   :  { %29 = vsyncpa [#allocation3 + $0x1], 0 }
   0xb   :  { %30 = vsyncpa [#allocation5], 0 }
   0xc   :  { %32 = vsyncpa [#allocation5 + $0x1], 0  ;;  %s4459_s2 = smov 0   ;;  %s4461_s25 = smov 0  }
   0xd   :  { %s4463_s26 = smov 0   ;;  %s4465_s27 = smov 0  }
   0xe LB: > { %5141 = sst [smem:[#allocation8_spill]] %s4319_s2  ;;  %s4480_s3 = sadd.s32 4294967295, %s4331_s27   ;;  %s4331_s27 = sphi %s4465_s27, %s5170_s27   ;;  %s4327_s26 = sphi %s4463_s26, %s5172_s26   ;;  %s4323_s25 = sphi %s4461_s25, %s5174_s25   ;;  %s4319_s2 = sphi %s4459_s2, %s5173_s2  }
   0xf   : > { %5142 = sst [smem:[#allocation9_spill]] %s4327_s26  ;;  %s3602_s28 = sadd.s32 4294967294, %s4331_s27  }
  0x10   : > { %s4484_s29 = sadd.s32 1, %s4331_s27   ;;  %s475_s0 = sadd.s32 1, %s4327_s26 }
  0x11   : > { %5143 = sst [smem:[#allocation10_spill]] %s4484_s29  ;;  %s472_s4 = ssub.s32 %s4331_s27, %s4484_s29 }
  0x12   : > { %p485_p0 = scmp.ne.s32.totalorder %s4327_s26, %s4323_s25  ;;  %p473_p1 = scmp.eq.s32.totalorder %s472_s4, 0 }
  0x13   : > { %p486_p2 = scmp.eq.s32.totalorder %s4480_s3, 1  ;;  %p491_p3 = scmp.ne.s32.totalorder %s4323_s25, %s4319_s2 }
  0x14   : > { %p492_p4 = scmp.eq.s32.totalorder %s3602_s28, 1  ;;  %p3605_p7 = scmp.ge.s32.totalorder %s4331_s27, 1 }
  0x15   : > { %s4495_s30 = scalar_select %p473_p1, %s4327_s26, %s475_s0  }
  0x16   : > { %p4497_p5 = por %p486_p2, %p485_p0  ;;  %p4501_p6 = por %p492_p4, %p491_p3 }
  0x17   : > { %5144 = sst [smem:[#allocation11_spill]] %s4495_s30  ;;  %p603_p8 = scmp.lt.s32.totalorder %s4331_s27, 3 }
  0x18   : > { %s5146_s22 = scalar_select %p4501_p6, 1, 0 }
  0x19   : > { %p604_p9 = pnand %p3605_p7, %p603_p8 }
  0x1a   : > { %5147 = sst [smem:[#allocation12_spill]] %s5146_s22  ;;  %p668_p10 = scmp.lt.s32.totalorder (!%p604_p9), %s4480_s3, 1  ;;  %vm685_vm0 = vcmask (!%p604_p9), 261120   ;;  %v4333_v10 = vmov (!%p604_p9), 0.0|0.0   ;;  %vm4334_vm1 = vmmov (!%p604_p9), 0   ;;  %v4335_v13 = vmov (!%p604_p9), 0.0  }
  0x1b   : > { %607 = sbr.rel (%p604_p9) target bundleno = 8107 (0x1fab), region = 100  ;;  %s5148_s0 = sld [smem:[#allocation13_spill]] (!%p604_p9)  ;;  %4053 = vmatprep.subr.bf16.mxu1 (!%p604_p9), %v4333_v10  ;;  %3813 = vmatprep.mubr.msk.f32.mxu1 (!%p604_p9), %vm4334_vm1, %v4335_v13  ;;  %vm806_vm2 = vcmask (!%p604_p9), 64512   ;;  %vm1904_vm3 = vcmask (!%p604_p9), 523264  }
  0x1c   : > { %s5149_s29 = sld [smem:[#allocation17_spill]] (!%p604_p9)  ;;  %3826 = vmatprep.subr.mxu0 (!%p604_p9), %v4335_v13  ;;  %3828 = vmatprep.mubr.msk.f32.mxu0 (!%p604_p9), %vm4334_vm1, %v4335_v13  ;;  %s5150_s30 = sld [smem:[#allocation15_spill]] (!%p604_p9) }
  0x1d   : > { %s5129_s2 = smov (!%p604_p9), 96   ;;  %s5128_s26 = smov (!%p604_p9), 120  }
  0x1e   : > { %s5127_s28 = smov (!%p604_p9), 56   ;;  %s5126_s22 = smov (!%p604_p9), 80  }
  0x1f   : > { %s5154_s6 = sld [smem:[#allocation19_spill]] (!%p604_p9)  ;;  %s5155_s7 = sld [smem:[#allocation20_spill]] (!%p604_p9) }
  0x22   : > { %s4509_s23 = scalar_select %p668_p10, %s4480_s3, 1  ;;  %v714_v7 = vld [vmem:[%s5149_s29] sm:$0xff]  ;;  %v715_v8 = vld [vmem:[%s5149_s29 + $0x8] sm:$0xff]  ;;  %v716_v9 = vld [vmem:[%s5149_s29 + $0x10] sm:$0xff] }
  0x23   : > { %v4054_v11 = vpack.c.bf16 %v715_v8, %v714_v7  ;;  %v717_v12 = vld [vmem:[%s5149_s29 + $0x18] sm:$0xff]  ;;  %v3608_v19 = vld [vmem:[%s5150_s30] ss:$0 sm:$0xff]  ;;  %s5130_s30 = smov 88  }
  0x24   : > { %s3606_s1 = sshll.u32 %s4509_s23, 3  ;;  %v4057_v14 = vpack.c.bf16 %v717_v12, %v716_v9 }
  0x25   : > { %s671_s4 = scalar_lea.vmem %s5148_s0, %s3606_s1  ;;  %4055 = vmatpush3.bf16.msra.mxu1 %v4054_v11  ;;  %s5151_s1 = sld [smem:[#allocation16_spill]]  ;;  %v799_v51 = vld [vmem:[%s5154_s6 + $0x8] sm:$0xff]  ;;  %v798_v60 = vld [vmem:[%s5154_s6] sm:$0xff] }
  0x26   : > { %v675_v0 = vld [vmem:[%s671_s4] sm:$0xff]  ;;  %4056 = vmatprep.subr.bf16.mxu1 %v4333_v10  ;;  %s5152_s0 = sld [smem:[#allocation18_spill]]  ;;  %s5120_s4 = smov 112  }
  0x27   : > { %v686_v1 = vsel %vm685_vm0, %v675_v0, 0.0 }
  0x28   : > { %687 = vadd.xlane.f32.xlu0 %v686_v1 }
  0x29   : > { %4058 = vmatpush3.bf16.msra.mxu1 %v4057_v14 }
  0x2a   : > { %3816 = vmatprep.subr.mxu1 %v4335_v13 }
  0x2b   : > { %v3609_v21 = vld [vmem:[%s5151_s1] ss:$0 sm:$0xff]  ;;  %s5153_s1 = sld [smem:[#allocation14_spill]] }
  0x2c   : > { %v3610_v24 = vld [vmem:[%s5152_s0] ss:$0 sm:$0xff] }
  0x31   : > { %s674_s24 = scalar_lea.vmem %s5153_s1, %s4509_s23  ;;  %s5125_s23 = smov 64  }
  0x32   : > { %v4578_v32 = vld [vmem:[%s674_s24] ss:$0 sm:$0xff]  ;;  %s5121_s1 = smov 48   ;;  %s5122_s24 = smov 104  }
  0xb5   : > { %v688_v2 = vpop.xlane.xlu0 %687 }
  0xb6   : > { %v690_v3 = vmul.f32 0.03125, %v688_v2 }
  0xb8   : > { %v691_v4 = vsub.f32 %v675_v0, %v690_v3 }
  0xba   : > { %v692_v5 = vmul.f32 %v691_v4, %v691_v4 }
  0xbc   : > { %v693_v6 = vsel %vm685_vm0, %v692_v5, 0.0 }
  0xbd   : > { %694 = vadd.xlane.f32.xlu0 %v693_v6 }
 0x14a   : > { %v695_v15 = vpop.xlane.xlu0 %694 }
 0x14b   : > { %v696_v16 = vmul.f32 0.03125, %v695_v15 }
 0x14d   : > { %v697_v17 = vadd.f32 1e-12, %v696_v16 }
 0x14f   : > { %4189 = vrsqrt.f32 %v697_v17 }
 0x159   : > { %v4190_v18 = vpop.eup %4189 }
 0x15a   : > { %v699_v20 = vmul.f32 %v4190_v18, %v691_v4 }
 0x15c   : > { %v706_v22 = vmul.f32 %v3608_v19, %v699_v20 }
 0x15e   : > { %v4543_v23 = vadd.f32 %v3609_v21, %v706_v22 }
 0x160   : > { %3814 = vmatmul.mubr.msk.f32.vlgmr.msra.gmra.mrb[0].mxu1 %vm685_vm0, %v4543_v23 }
 0x161   : > { %3818 = vmatprep.mubr.msk.f32.mxu1 %vm4334_vm1, %v4335_v13 }
 0x233   : > { %v794_v25 = vpop.f32.mrb[0].mxu1 }
 0x234   : > { %v4552_v26 = vadd.f32 %v3610_v24, %v794_v25  ;;  %v3815_v27 = vpop.f32.mrb[1].mxu1 }
 0x235   : > { %v800_v27 = vld [vmem:[%s5154_s6 + $0x10] sm:$0xff] }
 0x236   : > { %804 = vrot.lane.b32.xlu1 %v4552_v26, %s5129_s2  ;;  %v4557_v28 = vmul.f32 0.35355338, %v4552_v26  ;;  %s5158_s2 = smov 120  }
 0x238   : > { %969 = vrot.lane.b32.xlu0 %v4557_v28, %s5128_s26  ;;  %s5159_s26 = smov 56  }
 0x23a   : > { %971 = vrot.lane.b32.xlu1 %v4552_v26, %s5130_s30  ;;  %s5156_s30 = smov 88  }
 0x2a8   : > { %v805_v29 = vpop.permute.xlu1 %804 }
 0x2a9   : > { %3817 = vmatpush3.xpose.msk.msra.mxu1 %vm806_vm2, %v805_v29 }
 0x2aa   : > { %3821 = vmatprep.subr.mxu1 %v4335_v13  ;;  %v970_v31 = vpop.permute.xlu0 %969 }
 0x2ac   : > { %v972_v30 = vpop.permute.xlu1 %971  ;;  %3819 = vmatmul.mubr.msk.f32.vlgmr.msra.gmra.mrb[2].mxu1 %vm806_vm2, %v4557_v28 }
 0x2ad   : > { %3827 = vmatpush3.xpose.msk.msra.mxu0 %vm806_vm2, %v972_v30  ;;  %3823 = vmatprep.mubr.msk.f32.mxu1 %vm4334_vm1, %v4335_v13 }
 0x2ae   : > { %3836 = vmatprep.subr.mxu0 %v4335_v13 }
 0x2b0   : > { %3829 = vmatmul.mubr.msk.f32.vlgmr.msra.gmra.mrb[0].mxu0 %vm806_vm2, %v970_v31 }
 0x2b1   : > { %3838 = vmatprep.mubr.msk.f32.mxu0 %vm4334_vm1, %v4335_v13  ;;  %3837 = vmatpush3.msra.mxu0 %v799_v51 }
 0x2b2   : > { %3846 = vmatprep.subr.mxu0 %v4335_v13 }
 0x37f   : > { %v878_v33 = vpop.f32.mrb[2].mxu1 }
 0x380   : > { %v879_v34 = vadd.f32 %v4578_v32, %v878_v33  ;;  %v3820_v35 = vpop.f32.mrb[3].mxu1 }
 0x382   : > { %v882_v36 = vsel %vm806_vm2, %v879_v34, -inf }
 0x383   : > { %v1043_v37 = vpop.f32.mrb[0].mxu0  ;;  %883 = vmax.xlane.f32.xlu1 %v882_v36 }
 0x384   : > { %v1044_v38 = vadd.f32 %v4578_v32, %v1043_v37  ;;  %v3830_v39 = vpop.f32.mrb[1].mxu0 }
 0x386   : > { %v1047_v40 = vsel %vm806_vm2, %v1044_v38, -inf }
 0x387   : > { %1048 = vmax.xlane.f32.xlu0 %v1047_v40  ;;  %v801_v40 = vld [vmem:[%s5154_s6 + $0x18] sm:$0xff] }
 0x39d   : > { %1058 = vrot.lane.b32.xlu0 %v4552_v26, %s5127_s28 }
 0x410   : > { %v884_v41 = vpop.xlane.xlu1 %883 }
 0x411   : > { %v885_v42 = vsub.f32 %v879_v34, %v884_v41 }
 0x413   : > { %v886_v43 = vmul.f32 1.442695, %v885_v42 }
 0x414   : > { %v1049_v44 = vpop.xlane.xlu0 %1048 }
 0x415   : > { %4191 = vpow2.f32 %v886_v43  ;;  %v1050_v45 = vsub.f32 %v1044_v38, %v1049_v44 }
 0x417   : > { %v1051_v46 = vmul.f32 1.442695, %v1050_v45 }
 0x418   : > { %v1059_v57 = vpop.permute.xlu0 %1058 }
 0x419   : > { %4193 = vpow2.f32 %v1051_v46 }
 0x41f   : > { %v4192_v47 = vpop.eup %4191 }
 0x420   : > { %v888_v48 = vsel %vm806_vm2, %v4192_v47, 0.0 }
 0x421   : > { %889 = vadd.xlane.f32.xlu1 %v888_v48 }
 0x423   : > { %v4194_v49 = vpop.eup %4193 }
 0x424   : > { %v1053_v50 = vsel %vm806_vm2, %v4194_v49, 0.0 }
 0x425   : > { %1054 = vadd.xlane.f32.xlu1 %v1053_v50  ;;  %v3628_v50 = vld [vmem:[%s5155_s7] ss:$0 sm:$0xff] }
 0x436   : > { %893 = vrot.lane.b32.xlu1 %v4552_v26, %s5125_s23  ;;  %s5162_s23 = smov 112  }
 0x43a   : > { %1282 = vrot.lane.b32.xlu1 %v4552_v26, %s5126_s22  ;;  %s5157_s22 = smov 96  }
 0x43e   : > { %1280 = vrot.lane.b32.xlu1 %v4557_v28, %s5120_s4  ;;  %s5123_s4 = smov 72  }
 0x4ae   : > { %v890_v52 = vpop.xlane.xlu1 %889 }
 0x4af   : > { %4195 = vrcp.f32 %v890_v52 }
 0x4b2   : > { %v1055_v53 = vpop.xlane.xlu1 %1054 }
 0x4b3   : > { %4197 = vrcp.f32 %v1055_v53 }
 0x4b6   : > { %v894_v54 = vpop.permute.xlu1 %893 }
 0x4b7   : > { %3822 = vmatpush3.msra.mxu1 %v894_v54 }
 0x4b8   : > { %3831 = vmatprep.subr.mxu1 %v4335_v13 }
 0x4b9   : > { %v4196_v55 = vpop.eup %4195 }
 0x4ba   : > { %v892_v56 = vmul.f32 %v4196_v55, %v4192_v47  ;;  %v1283_v63 = vpop.permute.xlu1 %1282 }
 0x4bc   : > { %3824 = vmatmul.mubr.msk.f32.vlgmr.msra.gmra.mrb[4].mxu1 %vm806_vm2, %v892_v56 }
 0x4bd   : > { %v4198_v58 = vpop.eup %4197  ;;  %3832 = vmatpush3.msra.mxu1 %v1059_v57  ;;  %3833 = vmatprep.mubr.msk.f32.mxu1 %vm4334_vm1, %v4335_v13 }
 0x4be   : > { %v1057_v59 = vmul.f32 %v4198_v58, %v4194_v49  ;;  %3841 = vmatprep.subr.mxu1 %v4335_v13  ;;  %v1281_v2 = vpop.permute.xlu1 %1280 }
 0x4c0   : > { %3834 = vmatmul.mubr.msk.f32.vlgmr.msra.gmra.mrb[6].mxu1 %vm806_vm2, %v1057_v59 }
 0x4c1   : > { %3843 = vmatprep.mubr.msk.f32.mxu1 %vm4334_vm1, %v4335_v13  ;;  %3842 = vmatpush3.msra.mxu1 %v798_v60 }
 0x4c2   : > { %3851 = vmatprep.subr.mxu1 %v4335_v13 }
 0x58f   : > { %v965_v61 = vpop.f32.mrb[4].mxu1 }
 0x590   : > { %v3825_v62 = vpop.f32.mrb[5].mxu1  ;;  %3844 = vmatmul.mubr.msk.f32.vlgmr.msra.gmra.mrb[8].mxu1 %vm806_vm2, %v965_v61  ;;  %v1796_v61 = vld [vmem:[%s5101_s10] sm:$0xff] }
 0x591   : > { %3853 = vmatprep.mubr.msk.f32.mxu1 %vm4334_vm1, %v4335_v13  ;;  %v1797_v62 = vld [vmem:[%s5101_s10 + $0x8] sm:$0xff] }
 0x593   : > { %v1130_v0 = vpop.f32.mrb[6].mxu1 }
 0x594   : > { %v3835_v1 = vpop.f32.mrb[7].mxu1  ;;  %3839 = vmatmul.mubr.msk.f32.vlgmr.msra.gmra.mrb[2].mxu0 %vm806_vm2, %v1130_v0  ;;  %v1799_v0 = vld [vmem:[%s5101_s10 + $0x18] sm:$0xff] }
 0x595   : > { %3847 = vmatpush3.xpose.msk.msra.mxu0 %vm806_vm2, %v1283_v63  ;;  %3848 = vmatprep.mubr.msk.f32.mxu0 %vm4334_vm1, %v4335_v13  ;;  %v4060_v63 = vpack.c.bf16 %v1797_v62, %v1796_v61  ;;  %v3635_v61 = vld [vmem:[%s5105_s14] ss:$0 sm:$0xff] }
 0x596   : > { %3856 = vmatprep.subr.mxu0 %v4335_v13 }
 0x598   : > { %3849 = vmatmul.mubr.msk.f32.vlgmr.msra.gmra.mrb[4].mxu0 %vm806_vm2, %v1281_v2 }
 0x599   : > { %3858 = vmatprep.mubr.msk.f32.mxu0 %vm4334_vm1, %v4335_v13  ;;  %3857 = vmatpush3.msra.mxu0 %v800_v27  ;;  %v3631_v27 = vld [vmem:[%s5102_s11] ss:$0 sm:$0xff] }
 0x59a   : > { %3866 = vmatprep.subr.mxu0 %v4335_v13 }
 0x663   : > { %v1276_v3 = vpop.f32.mrb[8].mxu1 }
 0x664   : > { %v3845_v4 = vpop.f32.mrb[9].mxu1 }
 0x667   : > { %v1203_v5 = vpop.f32.mrb[2].mxu0 }
 0x668   : > { %v1277_v6 = vadd.f32 %v1276_v3, %v1203_v5  ;;  %v3840_v7 = vpop.f32.mrb[3].mxu0 }
 0x66b   : > { %v1354_v8 = vpop.f32.mrb[4].mxu0 }
 0x66c   : > { %v1355_v9 = vadd.f32 %v4578_v32, %v1354_v8  ;;  %v3850_v11 = vpop.f32.mrb[5].mxu0  ;;  %v3630_v8 = vld [vmem:[%s5100_s9] ss:$0 sm:$0xff] }
 0x66e   : > { %v1358_v12 = vsel %vm806_vm2, %v1355_v9, -inf }
 0x66f   : > { %1359 = vmax.xlane.f32.xlu1 %v1358_v12  ;;  %v1889_v12 = vld [vmem:[%s5103_s12] sm:$0xff] }
 0x680   : > { %1369 = vrot.lane.b32.xlu1 %v4552_v26, %s5121_s1  ;;  %s5124_s1 = smov 40  }
 0x684   : > { %1519 = vrot.lane.b32.xlu1 %v4557_v28, %s5122_s24  ;;  %s5161_s24 = smov 64  }
 0x6fc   : > { %v1360_v14 = vpop.xlane.xlu1 %1359 }
 0x6fd   : > { %v1361_v15 = vsub.f32 %v1355_v9, %v1360_v14  ;;  %v1890_v14 = vld [vmem:[%s5103_s12 + $0x8] sm:$0xff] }
 0x6ff   : > { %v1362_v16 = vmul.f32 1.442695, %v1361_v15  ;;  %v4066_v15 = vpack.c.bf16 %v1890_v14, %v1889_v12 }
 0x700   : > { %v1370_v17 = vpop.permute.xlu1 %1369 }
 0x701   : > { %4199 = vpow2.f32 %v1362_v16  ;;  %3852 = vmatpush3.msra.mxu1 %v1370_v17  ;;  %v1891_v16 = vld [vmem:[%s5103_s12 + $0x10] sm:$0xff]  ;;  %v1892_v17 = vld [vmem:[%s5103_s12 + $0x18] sm:$0xff] }
 0x702   : > { %3861 = vmatprep.subr.mxu1 %v4335_v13 }
 0x704   : > { %v1520_v25 = vpop.permute.xlu1 %1519 }
 0x70b   : > { %v4200_v18 = vpop.eup %4199 }
 0x70c   : > { %v1364_v19 = vsel %vm806_vm2, %v4200_v18, 0.0 }
 0x70d   : > { %1365 = vadd.xlane.f32.xlu0 %v1364_v19  ;;  %v1893_v19 = vld [vmem:[%s5103_s12 + $0x20] sm:$0xff] }
 0x723   : > { %1521 = vrot.lane.b32.xlu0 %v4552_v26, %s5123_s4  ;;  %s5160_s4 = smov 80  }
 0x79a   : > { %v1366_v20 = vpop.xlane.xlu0 %1365 }
 0x79b   : > { %4201 = vrcp.f32 %v1366_v20  ;;  %v1894_v20 = vld [vmem:[%s5103_s12 + $0x28] sm:$0xff] }
 0x79e   : > { %v1522_v24 = vpop.permute.xlu0 %1521 }
 0x7a5   : > { %v4202_v21 = vpop.eup %4201 }
 0x7a6   : > { %v1368_v22 = vmul.f32 %v4202_v21, %v4200_v18  ;;  %v4069_v18 = vpack.c.bf16 %v1892_v17, %v1891_v16  ;;  %v4072_v21 = vpack.c.bf16 %v1894_v20, %v1893_v19 }
 0x7a8   : > { %3854 = vmatmul.mubr.msk.f32.vlgmr.msra.gmra.mrb[10].mxu1 %vm806_vm2, %v1368_v22  ;;  %v1895_v22 = vld [vmem:[%s5103_s12 + $0x30] sm:$0xff] }
 0x7a9   : > { %3862 = vmatpush3.xpose.msk.msra.mxu1 %vm806_vm2, %v1522_v24  ;;  %3863 = vmatprep.mubr.msk.f32.mxu1 %vm4334_vm1, %v4335_v13  ;;  %v1896_v24 = vld [vmem:[%s5103_s12 + $0x38] sm:$0xff] }
 0x7aa   : > { %3871 = vmatprep.subr.mxu1 %v4335_v13 }
 0x7ac   : > { %3864 = vmatmul.mubr.msk.f32.vlgmr.msra.gmra.mrb[12].mxu1 %vm806_vm2, %v1520_v25  ;;  %v4075_v25 = vpack.c.bf16 %v1896_v24, %v1895_v22 }
 0x7ad   : > { %3873 = vmatprep.mubr.msk.f32.mxu1 %vm4334_vm1, %v4335_v13  ;;  %3872 = vmatpush3.msra.mxu1 %v801_v40 }
 0x7ae   : > { %4059 = vmatprep.subr.bf16.mxu1 %v4333_v10 }
 0x87b   : > { %v1441_v28 = vpop.f32.mrb[10].mxu1 }
 0x87c   : > { %v3855_v29 = vpop.f32.mrb[11].mxu1  ;;  %3859 = vmatmul.mubr.msk.f32.vlgmr.msra.gmra.mrb[6].mxu0 %vm806_vm2, %v1441_v28 }
 0x87d   : > { %3868 = vmatprep.mubr.msk.f32.mxu0 %vm4334_vm1, %v4335_v13 }
 0x87f   : > { %v1593_v30 = vpop.f32.mrb[12].mxu1 }
 0x880   : > { %v1594_v31 = vadd.f32 %v4578_v32, %v1593_v30  ;;  %v3865_v33 = vpop.f32.mrb[13].mxu1 }
 0x882   : > { %v1597_v34 = vsel %vm806_vm2, %v1594_v31, -inf }
 0x883   : > { %1598 = vmax.xlane.f32.xlu1 %v1597_v34 }
 0x910   : > { %v1599_v35 = vpop.xlane.xlu1 %1598 }
 0x911   : > { %v1600_v36 = vsub.f32 %v1594_v31, %v1599_v35 }
 0x913   : > { %v1601_v37 = vmul.f32 1.442695, %v1600_v36 }
 0x915   : > { %4203 = vpow2.f32 %v1601_v37 }
 0x91f   : > { %v4204_v38 = vpop.eup %4203 }
 0x920   : > { %v1603_v39 = vsel %vm806_vm2, %v4204_v38, 0.0 }
 0x921   : > { %1604 = vadd.xlane.f32.xlu0 %v1603_v39 }
 0x937   : > { %1608 = vrot.lane.b32.xlu0 %v4552_v26, %s5124_s1  ;;  %s5166_s1 = smov 40  }
 0x94f   : > { %v1514_v41 = vpop.f32.mrb[6].mxu0 }
 0x950   : > { %v1518_v42 = vadd.f32 %v1514_v41, %v1277_v6  ;;  %v3860_v43 = vpop.f32.mrb[7].mxu0  ;;  %v3629_v6 = vld [vmem:[%s5099_s8] ss:$0 sm:$0xff] }
 0x951   : > { %v3633_v41 = vld [vmem:[%s5104_s13] ss:$0 sm:$0xff] }
 0x9ae   : > { %v1605_v44 = vpop.xlane.xlu0 %1604 }
 0x9af   : > { %4205 = vrcp.f32 %v1605_v44 }
 0x9b2   : > { %v1609_v45 = vpop.permute.xlu0 %1608 }
 0x9b3   : > { %3867 = vmatpush3.msra.mxu0 %v1609_v45 }
 0x9b4   : > { %4077 = vmatprep.subr.bf16.mxu0 %v4333_v10 }
 0x9b9   : > { %v4206_v46 = vpop.eup %4205 }
 0x9ba   : > { %v1607_v47 = vmul.f32 %v4206_v46, %v4204_v38 }
 0x9bc   : > { %3869 = vmatmul.mubr.msk.f32.vlgmr.msra.gmra.mrb[8].mxu0 %vm806_vm2, %v1607_v47 }
 0x9bd   : > { %3914 = vmatprep.mubr.msk.f32.mxu0 %vm4334_vm1, %v4335_v13 }
 0xa8f   : > { %v1680_v26 = vpop.f32.mrb[8].mxu0 }
 0xa90   : > { %v3870_v48 = vpop.f32.mrb[9].mxu0  ;;  %3874 = vmatmul.mubr.msk.f32.vlgmr.msra.gmra.mrb[14].mxu1 %vm806_vm2, %v1680_v26 }
 0xa91   : > { %3884 = vmatprep.mubr.msk.f32.mxu1 %vm4334_vm1, %v4335_v13  ;;  %4061 = vmatpush3.bf16.msra.mxu1 %v4060_v63  ;;  %v3636_v63 = vld [vmem:[%s5106_s15] ss:$0 sm:$0xff] }
 0xa92   : > { %4062 = vmatprep.subr.bf16.mxu1 %v4333_v10 }
 0xb63   : > { %v1753_v49 = vpop.f32.mrb[14].mxu1 }
 0xb64   : > { %v1757_v51 = vadd.f32 %v1753_v49, %v1518_v42  ;;  %v3875_v52 = vpop.f32.mrb[15].mxu1 }
 0xb65   : > { %v3638_v52 = vld [vmem:[%s5149_s29 + $0x28] sm:$0xff] }
 0xb66   : > { %v1765_v53 = vadd.f32 %v3628_v50, %v1757_v51  ;;  %v3637_v51 = vld [vmem:[%s5149_s29 + $0x20] sm:$0xff] }
 0xb68   : > { %v1766_v54 = vadd.f32 %v1765_v53, %v4543_v23  ;;  %v1798_v23 = vld [vmem:[%s5101_s10 + $0x10] sm:$0xff]  ;;  %v4078_v53 = vpack.c.bf16 %v3638_v52, %v3637_v51 }
 0xb69   : > { %v4063_v1 = vpack.c.bf16 %v1799_v0, %v1798_v23 }
 0xb6a   : > { %v1769_v55 = vsel %vm685_vm0, %v1766_v54, 0.0  ;;  %4079 = vmatpush3.bf16.msra.mxu0 %v4078_v53 }
 0xb6b   : > { %1770 = vadd.xlane.f32.xlu1 %v1769_v55  ;;  %4064 = vmatpush3.bf16.msra.mxu1 %v4063_v1  ;;  %v3640_v55 = vld [vmem:[%s5149_s29 + $0x38] sm:$0xff]  ;;  %v3642_v1 = vld [vmem:[%s5152_s0 + $0x1] ss:$0 sm:$0xff] }
 0xb6c   : > { %4065 = vmatprep.subr.bf16.mxu1 %v4333_v10  ;;  %4080 = vmatprep.subr.bf16.mxu0 %v4333_v10 }
 0xbf8   : > { %v1771_v56 = vpop.xlane.xlu1 %1770 }
 0xbf9   : > { %v1772_v57 = vmul.f32 0.03125, %v1771_v56 }
 0xbfb   : > { %v1773_v58 = vsub.f32 %v1766_v54, %v1772_v57  ;;  %v3639_v54 = vld [vmem:[%s5149_s29 + $0x30] sm:$0xff] }
 0xbfc   : > { %v4081_v56 = vpack.c.bf16 %v3640_v55, %v3639_v54 }
 0xbfd   : > { %v1774_v59 = vmul.f32 %v1773_v58, %v1773_v58 }
 0xbfe   : > { %4082 = vmatpush3.bf16.msra.mxu0 %v4081_v56 }
 0xbff   : > { %v1775_v60 = vsel %vm685_vm0, %v1774_v59, 0.0  ;;  %3917 = vmatprep.subr.mxu0 %v4335_v13 }
 0xc00   : > { %1776 = vadd.xlane.f32.xlu1 %v1775_v60 }
 0xc8d   : > { %v1777_v2 = vpop.xlane.xlu1 %1776 }
 0xc8e   : > { %v1778_v3 = vmul.f32 0.03125, %v1777_v2 }
 0xc90   : > { %v1779_v4 = vadd.f32 1e-12, %v1778_v3 }
 0xc92   : > { %4207 = vrsqrt.f32 %v1779_v4 }
 0xc9c   : > { %v4208_v5 = vpop.eup %4207 }
 0xc9d   : > { %v1781_v7 = vmul.f32 %v4208_v5, %v1773_v58 }
 0xc9f   : > { %v1788_v9 = vmul.f32 %v3629_v6, %v1781_v7 }
 0xca1   : > { %v1795_v11 = vadd.f32 %v3630_v8, %v1788_v9 }
 0xca3   : > { %3885 = vmatmul.mubr.msk.f32.vlgmr.msra.gmra.mrb[16].mxu1 %vm685_vm0, %v1795_v11 }
 0xca4   : > { %3903 = vmatprep.mubr.msk.f32.mxu1 %vm4334_vm1, %v4335_v13  ;;  %4067 = vmatpush3.bf16.msra.mxu1 %v4066_v15 }
 0xca5   : > { %4068 = vmatprep.subr.bf16.mxu1 %v4333_v10 }
 0xca8   : > { %4070 = vmatpush3.bf16.msra.mxu1 %v4069_v18 }
 0xca9   : > { %4071 = vmatprep.subr.bf16.mxu1 %v4333_v10 }
 0xcac   : > { %4073 = vmatpush3.bf16.msra.mxu1 %v4072_v21 }
 0xcad   : > { %4074 = vmatprep.subr.bf16.mxu1 %v4333_v10 }
 0xcb0   : > { %4076 = vmatpush3.bf16.msra.mxu1 %v4075_v25 }
 0xcb1   : > { %3922 = vmatprep.subr.mxu1 %v4335_v13 }
 0xd76   : > { %v1876_v28 = vpop.f32.mrb[16].mxu1 }
 0xd77   : > { %v1877_v29 = vadd.f32 %v3631_v27, %v1876_v28  ;;  %v3886_v30 = vpop.f32.mrb[17].mxu1 }
 0xd79   : > { %v1881_v31 = vmul.f32 0.044715, %v1877_v29  ;;  %v1880_v38 = vmul.f32 0.5, %v1877_v29 }
 0xd7b   : > { %v1882_v33 = vmul.f32 %v1881_v31, %v1877_v29  ;;  %v3645_v31 = vld [vmem:[%s5154_s6 + $0x28] sm:$0xff] }
 0xd7d   : > { %v1883_v34 = vmul.f32 %v1882_v33, %v1877_v29 }
 0xd7f   : > { %v1884_v35 = vadd.f32 %v1883_v34, %v1877_v29 }
 0xd81   : > { %v1885_v36 = vmul.f32 0.7978846, %v1884_v35 }
 0xd83   : > { %4209 = vtanh.f32 %v1885_v36 }
 0xd8d   : > { %v4210_v37 = vpop.eup %4209 }
 0xd8e   : > { %v1887_v39 = vadd.f32 1.0, %v4210_v37 }
 0xd90   : > { %v1888_v40 = vmul.f32 %v1887_v39, %v1880_v38 }
 0xd92   : > { %3904 = vmatmul.mubr.msk.f32.vlgmr.msra.gmra.mrb[18].mxu1 %vm1904_vm3, %v1888_v40 }
 0xd93   : > { %3924 = vmatprep.mubr.msk.f32.mxu1 %vm4334_vm1, %v4335_v13 }
 0xe65   : > { %v1974_v42 = vpop.f32.mrb[18].mxu1 }
 0xe66   : > { %v1975_v43 = vadd.f32 %v3633_v41, %v1974_v42  ;;  %v3905_v44 = vpop.f32.mrb[19].mxu1  ;;  %v3644_v41 = vld [vmem:[%s5154_s6 + $0x20] sm:$0xff] }
 0xe68   : > { %v1978_v45 = vadd.f32 %v1975_v43, %v1795_v11 }
 0xe6a   : > { %v1981_v46 = vsel %vm685_vm0, %v1978_v45, 0.0 }
 0xe6b   : > { %1982 = vadd.xlane.f32.xlu1 %v1981_v46 }
 0xef8   : > { %v1983_v47 = vpop.xlane.xlu1 %1982 }
 0xef9   : > { %v1984_v26 = vmul.f32 0.03125, %v1983_v47 }
 0xefb   : > { %v1985_v48 = vsub.f32 %v1978_v45, %v1984_v26 }
 0xefd   : > { %v1986_v49 = vmul.f32 %v1985_v48, %v1985_v48 }
 0xeff   : > { %v1987_v50 = vsel %vm685_vm0, %v1986_v49, 0.0 }
 0xf00   : > { %1988 = vadd.xlane.f32.xlu1 %v1987_v50 }
 0xf8d   : > { %v1989_v57 = vpop.xlane.xlu1 %1988 }
 0xf8e   : > { %v1990_v58 = vmul.f32 0.03125, %v1989_v57 }
 0xf90   : > { %v1991_v59 = vadd.f32 1e-12, %v1990_v58 }
 0xf92   : > { %4211 = vrsqrt.f32 %v1991_v59 }
 0xf9c   : > { %v4212_v60 = vpop.eup %4211 }
 0xf9d   : > { %v1993_v62 = vmul.f32 %v4212_v60, %v1985_v48 }
 0xf9f   : > { %v2000_v23 = vmul.f32 %v3635_v61, %v1993_v62 }
 0xfa1   : > { %v4750_v0 = vadd.f32 %v3636_v63, %v2000_v23 }
 0xfa3   : > { %3915 = vmatmul.mubr.msk.f32.vlgmr.msra.gmra.mrb[10].mxu0 %vm685_vm0, %v4750_v0 }
 0xfa4   : > { %3919 = vmatprep.mubr.msk.f32.mxu0 %vm4334_vm1, %v4335_v13 }
0x1076   : > { %v2090_v2 = vpop.f32.mrb[10].mxu0 }
0x1077   : > { %v4759_v3 = vadd.f32 %v3642_v1, %v2090_v2  ;;  %v3916_v4 = vpop.f32.mrb[11].mxu0 }
0x1078   : > { %v3646_v4 = vld [vmem:[%s5154_s6 + $0x30] sm:$0xff] }
0x1079   : > { %2267 = vrot.lane.b32.xlu0 %v4759_v3, %s5156_s30  ;;  %2101 = vrot.lane.b32.xlu1 %v4759_v3, %s5157_s22  ;;  %v4766_v5 = vmul.f32 0.35355338, %v4759_v3 }
0x107d   : > { %2265 = vrot.lane.b32.xlu0 %v4766_v5, %s5158_s2  ;;  %s5163_s2 = smov 72  }
0x10eb   : > { %v2102_v6 = vpop.permute.xlu1 %2101  ;;  %v2268_v7 = vpop.permute.xlu0 %2267 }
0x10ec   : > { %3918 = vmatpush3.xpose.msk.msra.mxu0 %vm806_vm2, %v2102_v6 }
0x10ed   : > { %3927 = vmatprep.subr.mxu0 %v4335_v13 }
0x10ef   : > { %3920 = vmatmul.mubr.msk.f32.vlgmr.msra.gmra.mrb[12].mxu0 %vm806_vm2, %v4766_v5  ;;  %v2266_v8 = vpop.permute.xlu0 %2265 }
0x10f0   : > { %3928 = vmatpush3.xpose.msk.msra.mxu0 %vm806_vm2, %v2268_v7  ;;  %3929 = vmatprep.mubr.msk.f32.mxu0 %vm4334_vm1, %v4335_v13 }
0x10f1   : > { %3937 = vmatprep.subr.mxu0 %v4335_v13 }
0x10f3   : > { %3930 = vmatmul.mubr.msk.f32.vlgmr.msra.gmra.mrb[14].mxu0 %vm806_vm2, %v2266_v8 }
0x10f4   : > { %3939 = vmatprep.mubr.msk.f32.mxu0 %vm4334_vm1, %v4335_v13  ;;  %3938 = vmatpush3.msra.mxu0 %v3645_v31 }
0x10f5   : > { %3947 = vmatprep.subr.mxu0 %v4335_v13 }
0x11c2   : > { %v2174_v9 = vpop.f32.mrb[12].mxu0 }
0x11c3   : > { %v2175_v11 = vadd.f32 %v4578_v32, %v2174_v9  ;;  %v3921_v12 = vpop.f32.mrb[13].mxu0 }
0x11c5   : > { %v2178_v14 = vsel %vm806_vm2, %v2175_v11, -inf }
0x11c6   : > { %2179 = vmax.xlane.f32.xlu0 %v2178_v14  ;;  %v2339_v15 = vpop.f32.mrb[14].mxu0 }
0x11c7   : > { %v2340_v16 = vadd.f32 %v4578_v32, %v2339_v15  ;;  %v3931_v17 = vpop.f32.mrb[15].mxu0 }
0x11c9   : > { %v2343_v18 = vsel %vm806_vm2, %v2340_v16, -inf }
0x11ca   : > { %2344 = vmax.xlane.f32.xlu1 %v2343_v18 }
0x11db   : > { %2354 = vrot.lane.b32.xlu1 %v4759_v3, %s5159_s26  ;;  %s5164_s26 = smov 104  }
0x11df   : > { %2578 = vrot.lane.b32.xlu1 %v4759_v3, %s5160_s4  ;;  %s5165_s4 = smov 48  }
0x1253   : > { %v2180_v19 = vpop.xlane.xlu0 %2179 }
0x1254   : > { %v2181_v20 = vsub.f32 %v2175_v11, %v2180_v19 }
0x1256   : > { %v2182_v21 = vmul.f32 1.442695, %v2181_v20 }
0x1257   : > { %v2345_v22 = vpop.xlane.xlu1 %2344 }
0x1258   : > { %4213 = vpow2.f32 %v2182_v21  ;;  %v2346_v24 = vsub.f32 %v2340_v16, %v2345_v22 }
0x125a   : > { %v2347_v25 = vmul.f32 1.442695, %v2346_v24 }
0x125b   : > { %v2355_v38 = vpop.permute.xlu1 %2354 }
0x125c   : > { %4215 = vpow2.f32 %v2347_v25 }
0x125f   : > { %v2579_v45 = vpop.permute.xlu1 %2578 }
0x1262   : > { %v4214_v27 = vpop.eup %4213 }
0x1263   : > { %v2184_v28 = vsel %vm806_vm2, %v4214_v27, 0.0 }
0x1264   : > { %2185 = vadd.xlane.f32.xlu0 %v2184_v28 }
0x1266   : > { %v4216_v29 = vpop.eup %4215 }
0x1267   : > { %v2349_v30 = vsel %vm806_vm2, %v4216_v29, 0.0 }
0x1268   : > { %2350 = vadd.xlane.f32.xlu0 %v2349_v30 }
0x127e   : > { %2189 = vrot.lane.b32.xlu0 %v4759_v3, %s5161_s24  ;;  %s5010_s24 = sand.u32 1, %s4323_s25  }
0x127f   : > { %s3481_s0 = scalar_lea.sflag [#allocation3], %s5010_s24 }
0x1282   : > { %2576 = vrot.lane.b32.xlu0 %v4766_v5, %s5162_s23  ;;  %s661_s23 = scalar_lea.vmem [#allocation2], %s5010_s24 }
0x12f1   : > { %v2186_v33 = vpop.xlane.xlu0 %2185 }
0x12f2   : > { %4217 = vrcp.f32 %v2186_v33 }
0x12f5   : > { %v2351_v34 = vpop.xlane.xlu0 %2350 }
0x12f6   : > { %4219 = vrcp.f32 %v2351_v34 }
0x12f9   : > { %v2190_v35 = vpop.permute.xlu0 %2189 }
0x12fa   : > { %3923 = vmatpush3.msra.mxu1 %v2190_v35 }
0x12fb   : > { %3932 = vmatprep.subr.mxu1 %v4335_v13 }
0x12fc   : > { %v4218_v36 = vpop.eup %4217 }
0x12fd   : > { %v2188_v37 = vmul.f32 %v4218_v36, %v4214_v27  ;;  %v2577_v47 = vpop.permute.xlu0 %2576 }
0x12ff   : > { %3925 = vmatmul.mubr.msk.f32.vlgmr.msra.gmra.mrb[20].mxu1 %vm806_vm2, %v2188_v37 }
0x1300   : > { %v4220_v39 = vpop.eup %4219  ;;  %3933 = vmatpush3.msra.mxu1 %v2355_v38  ;;  %3934 = vmatprep.mubr.msk.f32.mxu1 %vm4334_vm1, %v4335_v13 }
0x1301   : > { %v2353_v40 = vmul.f32 %v4220_v39, %v4216_v29  ;;  %3942 = vmatprep.subr.mxu1 %v4335_v13  ;;  %v3665_v29 = vld [vmem:[%s5155_s7 + $0x1] ss:$0 sm:$0xff] }
0x1303   : > { %3935 = vmatmul.mubr.msk.f32.vlgmr.msra.gmra.mrb[22].mxu1 %vm806_vm2, %v2353_v40 }
0x1304   : > { %3944 = vmatprep.mubr.msk.f32.mxu1 %vm4334_vm1, %v4335_v13  ;;  %3943 = vmatpush3.msra.mxu1 %v3644_v41  ;;  %v3670_v41 = vld [vmem:[%s5101_s10 + $0x20] sm:$0xff] }
0x1305   : > { %3952 = vmatprep.subr.mxu1 %v4335_v13 }
0x13d2   : > { %v2261_v42 = vpop.f32.mrb[20].mxu1 }
0x13d3   : > { %v3926_v43 = vpop.f32.mrb[21].mxu1  ;;  %3945 = vmatmul.mubr.msk.f32.vlgmr.msra.gmra.mrb[24].mxu1 %vm806_vm2, %v2261_v42  ;;  %v3671_v42 = vld [vmem:[%s5101_s10 + $0x28] sm:$0xff] }
0x13d4   : > { %3954 = vmatprep.mubr.msk.f32.mxu1 %vm4334_vm1, %v4335_v13  ;;  %v4084_v43 = vpack.c.bf16 %v3671_v42, %v3670_v41  ;;  %v3392_v42 = vld [vmem:[%s5109_s18] sm:$0xff] }
0x13d6   : > { %v2426_v44 = vpop.f32.mrb[22].mxu1 }
0x13d7   : > { %v3936_v46 = vpop.f32.mrb[23].mxu1  ;;  %3940 = vmatmul.mubr.msk.f32.vlgmr.msra.gmra.mrb[16].mxu0 %vm806_vm2, %v2426_v44  ;;  %v3673_v44 = vld [vmem:[%s5101_s10 + $0x38] sm:$0xff] }
0x13d8   : > { %3948 = vmatpush3.xpose.msk.msra.mxu0 %vm806_vm2, %v2579_v45  ;;  %3949 = vmatprep.mubr.msk.f32.mxu0 %vm4334_vm1, %v4335_v13 }
0x13d9   : > { %3957 = vmatprep.subr.mxu0 %v4335_v13 }
0x13db   : > { %3950 = vmatmul.mubr.msk.f32.vlgmr.msra.gmra.mrb[18].mxu0 %vm806_vm2, %v2577_v47 }
0x13dc   : > { %3959 = vmatprep.mubr.msk.f32.mxu0 %vm4334_vm1, %v4335_v13  ;;  %3958 = vmatpush3.msra.mxu0 %v3646_v4 }
0x13dd   : > { %3967 = vmatprep.subr.mxu0 %v4335_v13 }
0x14a6   : > { %v2572_v26 = vpop.f32.mrb[24].mxu1 }
0x14a7   : > { %v3946_v48 = vpop.f32.mrb[25].mxu1 }
0x14aa   : > { %v2499_v49 = vpop.f32.mrb[16].mxu0 }
0x14ab   : > { %v2573_v50 = vadd.f32 %v2572_v26, %v2499_v49  ;;  %v3941_v51 = vpop.f32.mrb[17].mxu0  ;;  %v3668_v49 = vld [vmem:[%s5099_s8 + $0x1] ss:$0 sm:$0xff] }
0x14ac   : > { %v3669_v51 = vld [vmem:[%s5100_s9 + $0x1] ss:$0 sm:$0xff] }
0x14ae   : > { %v2650_v52 = vpop.f32.mrb[18].mxu0 }
0x14af   : > { %v2651_v53 = vadd.f32 %v4578_v32, %v2650_v52  ;;  %v3951_v54 = vpop.f32.mrb[19].mxu0 }
0x14b0   : > { %v3677_v54 = vld [vmem:[%s5103_s12 + $0x40] sm:$0xff] }
0x14b1   : > { %v2654_v55 = vsel %vm806_vm2, %v2651_v53, -inf }
0x14b2   : > { %2655 = vmax.xlane.f32.xlu1 %v2654_v55  ;;  %v3678_v55 = vld [vmem:[%s5103_s12 + $0x48] sm:$0xff] }
0x14c3   : > { %2817 = vrot.lane.b32.xlu1 %v4759_v3, %s5163_s2  ;;  %s3497_s2 = sshll.u32 %s661_s23, 4  ;;  %s3498_s2 = int_to_ptr.vmem [resolvable:$true] %s3497_s2 }
0x14c7   : > { %2815 = vrot.lane.b32.xlu1 %v4766_v5, %s5164_s26  ;;  %s4237_s26 = scalar_lea.vmem %s3498_s2, 16 }
0x14c8   : > { %p4238_p11 = scmp.ne.s32.totalorder %s3498_s2, %s4237_s26 }
0x14ca   : > { %p4239_p12 = pnand %p4238_p11, %p4497_p5 }
0x14cc   : > { %p4240_p13 = pneg %p4239_p12 }
0x153f   : > { %v2656_v56 = vpop.xlane.xlu1 %2655 }
0x1540   : > { %v2657_v57 = vsub.f32 %v2651_v53, %v2656_v56  ;;  %v4090_v56 = vpack.c.bf16 %v3678_v55, %v3677_v54  ;;  %v3400_v54 = vld [vmem:[%s5109_s18 + $0x40] sm:$0xff]  ;;  %v3401_v55 = vld [vmem:[%s5109_s18 + $0x48] sm:$0xff] }
0x1542   : > { %v2658_v58 = vmul.f32 1.442695, %v2657_v57  ;;  %v3679_v57 = vld [vmem:[%s5103_s12 + $0x50] sm:$0xff] }
0x1543   : > { %v2818_v23 = vpop.permute.xlu1 %2817 }
0x1544   : > { %4221 = vpow2.f32 %v2658_v58  ;;  %v3680_v58 = vld [vmem:[%s5103_s12 + $0x58] sm:$0xff] }
0x1547   : > { %v2816_v2 = vpop.permute.xlu1 %2815 }
0x154e   : > { %v4222_v59 = vpop.eup %4221 }
0x154f   : > { %v2660_v60 = vsel %vm806_vm2, %v4222_v59, 0.0 }
0x1550   : > { %2661 = vadd.xlane.f32.xlu0 %v2660_v60  ;;  %v3681_v60 = vld [vmem:[%s5103_s12 + $0x60] sm:$0xff] }
0x1566   : > { %2665 = vrot.lane.b32.xlu0 %v4759_v3, %s5165_s4  ;;  %s4347_s4 = smov [#allocation2]  }
0x15dd   : > { %v2662_v61 = vpop.xlane.xlu0 %2661 }
0x15de   : > { %4223 = vrcp.f32 %v2662_v61  ;;  %v3682_v61 = vld [vmem:[%s5103_s12 + $0x68] sm:$0xff] }
0x15e1   : > { %v2666_v62 = vpop.permute.xlu0 %2665 }
0x15e2   : > { %3953 = vmatpush3.msra.mxu1 %v2666_v62  ;;  %v4096_v62 = vpack.c.bf16 %v3682_v61, %v3681_v60  ;;  %v3404_v60 = vld [vmem:[%s5109_s18 + $0x60] sm:$0xff]  ;;  %v3405_v61 = vld [vmem:[%s5109_s18 + $0x68] sm:$0xff] }
0x15e3   : > { %3962 = vmatprep.subr.mxu1 %v4335_v13 }
0x15e8   : > { %v4224_v63 = vpop.eup %4223 }
0x15e9   : > { %v2664_v1 = vmul.f32 %v4224_v63, %v4222_v59  ;;  %v4093_v59 = vpack.c.bf16 %v3680_v58, %v3679_v57  ;;  %v3683_v63 = vld [vmem:[%s5103_s12 + $0x70] sm:$0xff]  ;;  %v3403_v58 = vld [vmem:[%s5109_s18 + $0x58] sm:$0xff] }
0x15ea   : > { %v3402_v57 = vld [vmem:[%s5109_s18 + $0x50] sm:$0xff] }
0x15eb   : > { %3955 = vmatmul.mubr.msk.f32.vlgmr.msra.gmra.mrb[26].mxu1 %vm806_vm2, %v2664_v1 }
0x15ec   : > { %3963 = vmatpush3.xpose.msk.msra.mxu1 %vm806_vm2, %v2818_v23  ;;  %3964 = vmatprep.mubr.msk.f32.mxu1 %vm4334_vm1, %v4335_v13  ;;  %v3684_v23 = vld [vmem:[%s5103_s12 + $0x78] sm:$0xff] }
0x15ed   : > { %3972 = vmatprep.subr.mxu1 %v4335_v13  ;;  %v4099_v1 = vpack.c.bf16 %v3684_v23, %v3683_v63  ;;  %v3406_v63 = vld [vmem:[%s5109_s18 + $0x70] sm:$0xff]  ;;  %v3407_v23 = vld [vmem:[%s5109_s18 + $0x78] sm:$0xff] }
0x15ef   : > { %3965 = vmatmul.mubr.msk.f32.vlgmr.msra.gmra.mrb[28].mxu1 %vm806_vm2, %v2816_v2  ;;  %v3675_v2 = vld [vmem:[%s5102_s11 + $0x1] ss:$0 sm:$0xff] }
0x15f0   : > { %3974 = vmatprep.mubr.msk.f32.mxu1 %vm4334_vm1, %v4335_v13 }
0x16be   : > { %v2737_v5 = vpop.f32.mrb[26].mxu1 }
0x16bf   : > { %v3956_v6 = vpop.f32.mrb[27].mxu1  ;;  %3960 = vmatmul.mubr.msk.f32.vlgmr.msra.gmra.mrb[20].mxu0 %vm806_vm2, %v2737_v5 }
0x16c0   : > { %3969 = vmatprep.mubr.msk.f32.mxu0 %vm4334_vm1, %v4335_v13 }
0x16c2   : > { %v2889_v7 = vpop.f32.mrb[28].mxu1 }
0x16c3   : > { %v2890_v8 = vadd.f32 %v4578_v32, %v2889_v7  ;;  %v3966_v9 = vpop.f32.mrb[29].mxu1  ;;  %v3647_v32 = vld [vmem:[%s5154_s6 + $0x38] sm:$0xff]  ;;  %s4241_s6 = sshll.u32 %s4347_s4, 4  ;;  %s4242_s6 = int_to_ptr.vmem [resolvable:$false] %s4241_s6 }
0x16c4   : > { %3973 = vmatpush3.msra.mxu1 %v3647_v32  ;;  %s4243_s7 = scalar_lea.vmem %s4242_s6, 32  ;;  %p4244_p0 = scmp.lt.s32.totalorder %s3498_s2, %s4242_s6 }
0x16c5   : > { %v2893_v11 = vsel %vm806_vm2, %v2890_v8, -inf  ;;  %4089 = vmatprep.subr.bf16.mxu1 %v4333_v10  ;;  %p4245_p1 = scmp.lt.s32.totalorder %s4243_s7, %s4237_s26 }
0x16c6   : > { %2894 = vmax.xlane.f32.xlu0 %v2893_v11 }
0x16c7   : > { %p4246_p2 = por %p4245_p1, %p4244_p0 }
0x16c9   : > { %p4247_p3 = pnand %p4246_p2, %p4240_p13 }
0x16dc   : > { %2904 = vrot.lane.b32.xlu0 %v4759_v3, %s5166_s1  ;;  %s5132_s1 = sshll.u32 %s4480_s3, 4 }
0x16dd   : > { %s5019_s22 = scalar_lea.hbm %s5111_s20, %s5132_s1 }
0x1753   : > { %v2895_v12 = vpop.xlane.xlu0 %2894 }
0x1754   : > { %v2896_v14 = vsub.f32 %v2890_v8, %v2895_v12 }
0x1756   : > { %v2897_v15 = vmul.f32 1.442695, %v2896_v14 }
0x1757   : > { %v2905_v16 = vpop.permute.xlu0 %2904 }
0x1758   : > { %4225 = vpow2.f32 %v2897_v15  ;;  %3968 = vmatpush3.msra.mxu0 %v2905_v16 }
0x1759   : > { %4083 = vmatprep.subr.bf16.mxu0 %v4333_v10 }
0x1762   : > { %v4226_v17 = vpop.eup %4225 }
0x1763   : > { %v2899_v18 = vsel %vm806_vm2, %v4226_v17, 0.0 }
0x1764   : > { %2900 = vadd.xlane.f32.xlu1 %v2899_v18  ;;  %v3686_v18 = vld [vmem:[%s5104_s13 + $0x1] ss:$0 sm:$0xff] }
0x1792   : > { %v2810_v3 = vpop.f32.mrb[20].mxu0 }
0x1793   : > { %v2814_v19 = vadd.f32 %v2810_v3, %v2573_v50  ;;  %v3961_v20 = vpop.f32.mrb[21].mxu0 }
0x17f1   : > { %v2901_v21 = vpop.xlane.xlu1 %2900 }
0x17f2   : > { %4227 = vrcp.f32 %v2901_v21 }
0x17fc   : > { %v4228_v22 = vpop.eup %4227 }
0x17fd   : > { %v2903_v24 = vmul.f32 %v4228_v22, %v4226_v17 }
0x17ff   : > { %3970 = vmatmul.mubr.msk.f32.vlgmr.msra.gmra.mrb[22].mxu0 %vm806_vm2, %v2903_v24 }
0x1800   : > { %3985 = vmatprep.mubr.msk.f32.mxu0 %vm4334_vm1, %v4335_v13  ;;  %4085 = vmatpush3.bf16.msra.mxu0 %v4084_v43  ;;  %v3393_v43 = vld [vmem:[%s5109_s18 + $0x8] sm:$0xff] }
0x1801   : > { %4086 = vmatprep.subr.bf16.mxu0 %v4333_v10 }
0x18d2   : > { %v2976_v25 = vpop.f32.mrb[22].mxu0 }
0x18d3   : > { %v3971_v27 = vpop.f32.mrb[23].mxu0  ;;  %3975 = vmatmul.mubr.msk.f32.vlgmr.msra.gmra.mrb[30].mxu1 %vm806_vm2, %v2976_v25 }
0x18d4   : > { %4004 = vmatprep.mubr.msk.f32.mxu1 %vm4334_vm1, %v4335_v13  ;;  %4091 = vmatpush3.bf16.msra.mxu1 %v4090_v56  ;;  %v4120_v56 = vpack.c.bf16 %v3401_v55, %v3400_v54 }
0x18d5   : > { %4092 = vmatprep.subr.bf16.mxu1 %v4333_v10 }
0x18d8   : > { %4094 = vmatpush3.bf16.msra.mxu1 %v4093_v59  ;;  %v4123_v59 = vpack.c.bf16 %v3403_v58, %v3402_v57 }
0x18d9   : > { %4095 = vmatprep.subr.bf16.mxu1 %v4333_v10 }
0x18dc   : > { %4097 = vmatpush3.bf16.msra.mxu1 %v4096_v62  ;;  %v4126_v62 = vpack.c.bf16 %v3405_v61, %v3404_v60 }
0x18dd   : > { %4098 = vmatprep.subr.bf16.mxu1 %v4333_v10 }
0x18e0   : > { %4100 = vmatpush3.bf16.msra.mxu1 %v4099_v1  ;;  %v4129_v1 = vpack.c.bf16 %v3407_v23, %v3406_v63 }
0x19a6   : > { %v3049_v28 = vpop.f32.mrb[30].mxu1 }
0x19a7   : > { %v3053_v30 = vadd.f32 %v3049_v28, %v2814_v19  ;;  %v3976_v31 = vpop.f32.mrb[31].mxu1 }
0x19a9   : > { %v3062_v33 = vadd.f32 %v3665_v29, %v3053_v30  ;;  %v3312_v29 = vld [vmem:[%s5107_s16] sm:$0xff]  ;;  %v3313_v30 = vld [vmem:[%s5107_s16 + $0x8] sm:$0xff] }
0x19aa   : > { %v4102_v31 = vpack.c.bf16 %v3313_v30, %v3312_v29 }
0x19ab   : > { %v3063_v34 = vadd.f32 %v3062_v33, %v4750_v0  ;;  %v3672_v0 = vld [vmem:[%s5101_s10 + $0x30] sm:$0xff] }
0x19ac   : > { %v4087_v45 = vpack.c.bf16 %v3673_v44, %v3672_v0  ;;  %v3314_v33 = vld [vmem:[%s5107_s16 + $0x10] sm:$0xff]  ;;  %v3691_v0 = vld [vmem:[%s5106_s15 + $0x1] ss:$0 sm:$0xff] }
0x19ad   : > { %v3068_v35 = vsel %vm685_vm0, %v3063_v34, 0.0 }
0x19ae   : > { %3069 = vadd.xlane.f32.xlu1 %v3068_v35  ;;  %4088 = vmatpush3.bf16.msra.mxu0 %v4087_v45  ;;  %v4108_v45 = vpack.c.bf16 %v3393_v43, %v3392_v42 }
0x19af   : > { %4101 = vmatprep.subr.bf16.mxu0 %v4333_v10 }
0x1a3b   : > { %v3070_v36 = vpop.xlane.xlu1 %3069 }
0x1a3c   : > { %v3071_v37 = vmul.f32 0.03125, %v3070_v36 }
0x1a3e   : > { %v3072_v38 = vsub.f32 %v3063_v34, %v3071_v37  ;;  %v3315_v34 = vld [vmem:[%s5107_s16 + $0x18] sm:$0xff] }
0x1a3f   : > { %v4105_v35 = vpack.c.bf16 %v3315_v34, %v3314_v33 }
0x1a40   : > { %v3073_v39 = vmul.f32 %v3072_v38, %v3072_v38 }
0x1a42   : > { %v3074_v40 = vsel %vm685_vm0, %v3073_v39, 0.0 }
0x1a43   : > { %3075 = vadd.xlane.f32.xlu1 %v3074_v40  ;;  %v3690_v40 = vld [vmem:[%s5105_s14 + $0x1] ss:$0 sm:$0xff] }
0x1ad0   : > { %v3076_v46 = vpop.xlane.xlu1 %3075 }
0x1ad1   : > { %v3077_v47 = vmul.f32 0.03125, %v3076_v46 }
0x1ad3   : > { %v3078_v26 = vadd.f32 1e-12, %v3077_v47  ;;  %v3394_v47 = vld [vmem:[%s5109_s18 + $0x10] sm:$0xff] }
0x1ad5   : > { %4229 = vrsqrt.f32 %v3078_v26  ;;  %v3395_v26 = vld [vmem:[%s5109_s18 + $0x18] sm:$0xff] }
0x1adf   : > { %v4230_v48 = vpop.eup %4229 }
0x1ae0   : > { %v3080_v50 = vmul.f32 %v4230_v48, %v3072_v38  ;;  %v4111_v48 = vpack.c.bf16 %v3395_v26, %v3394_v47 }
0x1ae2   : > { %v3087_v52 = vmul.f32 %v3668_v49, %v3080_v50  ;;  %v3396_v49 = vld [vmem:[%s5109_s18 + $0x20] sm:$0xff]  ;;  %v3397_v50 = vld [vmem:[%s5109_s18 + $0x28] sm:$0xff] }
0x1ae4   : > { %v3094_v53 = vadd.f32 %v3669_v51, %v3087_v52  ;;  %v4114_v51 = vpack.c.bf16 %v3397_v50, %v3396_v49  ;;  %v3398_v52 = vld [vmem:[%s5109_s18 + $0x30] sm:$0xff] }
0x1ae6   : > { %3986 = vmatmul.mubr.msk.f32.vlgmr.msra.gmra.mrb[24].mxu0 %vm685_vm0, %v3094_v53 }
0x1ae7   : > { %4015 = vmatprep.mubr.msk.f32.mxu0 %vm4334_vm1, %v4335_v13  ;;  %4103 = vmatpush3.bf16.msra.mxu0 %v4102_v31 }
0x1ae8   : > { %4104 = vmatprep.subr.bf16.mxu0 %v4333_v10 }
0x1aeb   : > { %4106 = vmatpush3.bf16.msra.mxu0 %v4105_v35 }
0x1aec   : > { %4107 = vmatprep.subr.bf16.mxu0 %v4333_v10 }
0x1bb9   : > { %v3177_v4 = vpop.f32.mrb[24].mxu0 }
0x1bba   : > { %v3178_v5 = vadd.f32 %v3675_v2, %v3177_v4  ;;  %v3987_v6 = vpop.f32.mrb[25].mxu0  ;;  %v3316_v2 = vld [vmem:[%s5108_s17] sm:$0x1] }
0x1bbc   : > { %v3182_v7 = vmul.f32 0.044715, %v3178_v5  ;;  %v3181_v15 = vmul.f32 0.5, %v3178_v5 }
0x1bbe   : > { %v3183_v8 = vmul.f32 %v3182_v7, %v3178_v5 }
0x1bc0   : > { %v3184_v9 = vmul.f32 %v3183_v8, %v3178_v5 }
0x1bc2   : > { %v3185_v11 = vadd.f32 %v3184_v9, %v3178_v5 }
0x1bc4   : > { %v3186_v12 = vmul.f32 0.7978846, %v3185_v11 }
0x1bc6   : > { %4231 = vtanh.f32 %v3186_v12 }
0x1bd0   : > { %v4232_v14 = vpop.eup %4231 }
0x1bd1   : > { %v3188_v16 = vadd.f32 1.0, %v4232_v14 }
0x1bd3   : > { %v3189_v17 = vmul.f32 %v3188_v16, %v3181_v15 }
0x1bd5   : > { %4005 = vmatmul.mubr.msk.f32.vlgmr.msra.gmra.mrb[32].mxu1 %vm1904_vm3, %v3189_v17 }
0x1ca8   : > { %v3276_v32 = vpop.f32.mrb[32].mxu1 }
0x1ca9   : > { %v3277_v3 = vadd.f32 %v3686_v18, %v3276_v32  ;;  %v4006_v19 = vpop.f32.mrb[33].mxu1 }
0x1cab   : > { %v3280_v20 = vadd.f32 %v3277_v3, %v3094_v53 }
0x1cad   : > { %v3285_v21 = vsel %vm685_vm0, %v3280_v20, 0.0 }
0x1cae   : > { %3286 = vadd.xlane.f32.xlu1 %v3285_v21 }
0x1d3b   : > { %v3287_v22 = vpop.xlane.xlu1 %3286 }
0x1d3c   : > { %v3288_v24 = vmul.f32 0.03125, %v3287_v22 }
0x1d3e   : > { %v3289_v25 = vsub.f32 %v3280_v20, %v3288_v24 }
0x1d40   : > { %v3290_v27 = vmul.f32 %v3289_v25, %v3289_v25 }
0x1d42   : > { %v3291_v28 = vsel %vm685_vm0, %v3290_v27, 0.0 }
0x1d43   : > { %3292 = vadd.xlane.f32.xlu1 %v3291_v28 }
0x1dd0   : > { %v3293_v36 = vpop.xlane.xlu1 %3292 }
0x1dd1   : > { %v3294_v37 = vmul.f32 0.03125, %v3293_v36 }
0x1dd3   : > { %v3295_v38 = vadd.f32 1e-12, %v3294_v37 }
0x1dd5   : > { %4233 = vrsqrt.f32 %v3295_v38 }
0x1ddf   : > { %v4234_v39 = vpop.eup %4233 }
0x1de0   : > { %v3297_v41 = vmul.f32 %v4234_v39, %v3289_v25 }
0x1de2   : > { %v3304_v44 = vmul.f32 %v3690_v40, %v3297_v41 }
0x1de4   : > { %v3311_v46 = vadd.f32 %v3691_v0, %v3304_v44 }
0x1de6   : > { %4016 = vmatmul.mubr.msk.f32.vlgmr.msra.gmra.mrb[26].mxu0 %vm685_vm0, %v3311_v46 }
0x1de7   : > { %4109 = vmatpush3.bf16.msra.mxu0 %v4108_v45  ;;  %4050 = vmatprep.mubr.msk.f32.mxu0 %vm4334_vm1, %v4335_v13  ;;  %v3399_v13 = vld [vmem:[%s5109_s18 + $0x38] sm:$0xff] }
0x1de8   : > { %4110 = vmatprep.subr.bf16.mxu0 %v4333_v10  ;;  %v4117_v53 = vpack.c.bf16 %v3399_v13, %v3398_v52 }
0x1deb   : > { %4112 = vmatpush3.bf16.msra.mxu0 %v4111_v48 }
0x1dec   : > { %4113 = vmatprep.subr.bf16.mxu0 %v4333_v10 }
0x1def   : > { %4115 = vmatpush3.bf16.msra.mxu0 %v4114_v51 }
0x1df0   : > { %4116 = vmatprep.subr.bf16.mxu0 %v4333_v10 }
0x1df3   : > { %4118 = vmatpush3.bf16.msra.mxu0 %v4117_v53 }
0x1df4   : > { %4119 = vmatprep.subr.bf16.mxu0 %v4333_v10 }
0x1df7   : > { %4121 = vmatpush3.bf16.msra.mxu0 %v4120_v56 }
0x1df8   : > { %4122 = vmatprep.subr.bf16.mxu0 %v4333_v10 }
0x1dfb   : > { %4124 = vmatpush3.bf16.msra.mxu0 %v4123_v59 }
0x1dfc   : > { %4125 = vmatprep.subr.bf16.mxu0 %v4333_v10 }
0x1dff   : > { %4127 = vmatpush3.bf16.msra.mxu0 %v4126_v62 }
0x1e00   : > { %4128 = vmatprep.subr.bf16.mxu0 %v4333_v10 }
0x1e03   : > { %4130 = vmatpush3.bf16.msra.mxu0 %v4129_v1 }
0x1eb9   : > { %v3386_v4 = vpop.f32.mrb[26].mxu0 }
0x1eba   : > { %v3387_v5 = vadd.f32 %v3386_v4, %v3316_v2  ;;  %v4017_v6 = vpop.f32.mrb[27].mxu0 }
0x1ebc   : > { %4235 = vtanh.f32 %v3387_v5 }
0x1ec6   : > { %v4236_v7 = vpop.eup %4235 }
0x1ec7   : > { %4051 = vmatmul.mubr.f32.vlgmr.msra.gmra.mrb[28].mxu0 %v4236_v7  ;;  %3391 = vst [vmem:[%s661_s23] sm:$0x1] %v4236_v7 }
0x1ec8   : > { %4250 = shalt.err (!%p4247_p3)
}
0x1ec9   : > { %s4251_s23 = scalar_lea.hbm %s5019_s22, 16  ;;  %s4255_s4 = scalar_lea.hbm %s5111_s20, 32 }
0x1eca   : > { %p4252_p4 = scmp.ne.s32.totalorder %s5019_s22, %s4251_s23  ;;  %p4256_p9 = scmp.lt.u32.totalorder %s5019_s22, %s5111_s20 }
0x1ecb   : > { %p4257_p10 = scmp.lt.u32.totalorder %s4255_s4, %s4251_s23  ;;  %p4259_p12 = scmp.lt.u32.totalorder %s4251_s23, %s5019_s22 }
0x1ecc   : > { %p4253_p7 = pnand %p4252_p4, %p4497_p5 }
0x1ecd   : > { %p4258_p11 = por %p4257_p10, %p4256_p9 }
0x1ece   : > { %p4254_p8 = pneg %p4253_p7 }
0x1ecf   : > { %p4260_p13 = por %p4259_p12, %p4258_p11 }
0x1ed1   : > { %p4261_p0 = pnand %p4260_p13, %p4254_p8 }
0x1ed3   : > { %4264 = shalt.err (!%p4261_p0)
}
0x1ed4   : > { %4131 = dma.vmem_to_hbm [thread:$0]  (%p4497_p5), %s3498_s2, 16, %s5019_s22, %s3481_s0   ;;  %v3408_v10 = vld [vmem:[%s5110_s19] sm:$0x1] }
0x1ed5   : > { %s667_s1 = scalar_lea.vmem [#allocation4], %s5010_s24  ;;  %s5167_s23 = sshll.u32 %s4480_s3, 4 }
0x1ed6   : > { %s3510_s28 = sshll.u32 %s667_s1, 4  ;;  %s5048_s6 = scalar_lea.hbm %s5112_s21, %s5167_s23  ;;  %s5050_s28 = int_to_ptr.vmem [resolvable:$true] %s3510_s28 }
0x1ed7   : > { %s3485_s22 = scalar_lea.sflag [#allocation5], %s5010_s24  ;;  %s4265_s2 = scalar_lea.vmem %s5050_s28, 16 }
0x1ed8   : > { %p4266_p1 = scmp.ne.s32.totalorder %s5050_s28, %s4265_s2  ;;  %s4348_s0 = smov [#allocation4]  }
0x1ed9   : > { %s4269_s7 = sshll.u32 %s4348_s0, 4  ;;  %s4270_s7 = int_to_ptr.vmem [resolvable:$false] %s4269_s7 }
0x1eda   : > { %p4267_p2 = pnand %p4266_p1, %p4497_p5  ;;  %s4271_s3 = scalar_lea.vmem %s4270_s7, 32 }
0x1edb   : > { %p4272_p4 = scmp.lt.s32.totalorder %s5050_s28, %s4270_s7  ;;  %p4273_p7 = scmp.lt.s32.totalorder %s4271_s3, %s4265_s2 }
0x1edc   : > { %p4268_p3 = pneg %p4267_p2 }
0x1edd   : > { %p4274_p8 = por %p4273_p7, %p4272_p4 }
0x1edf   : > { %p4275_p9 = pnand %p4274_p8, %p4268_p3 }
0x1f9a   : > { %v3475_v8 = vpop.f32.mrb[28].mxu0 }
0x1f9b   : > { %v3476_v9 = vadd.f32 %v3475_v8, %v3408_v10  ;;  %v4052_v11 = vpop.f32.mrb[29].mxu0 }
0x1f9d   : > { %3479 = vst [vmem:[%s667_s1] sm:$0x1] %v3476_v9 }
0x1f9e   : > { %4278 = shalt.err (!%p4275_p9)
}
0x1f9f   : > { %s4279_s24 = scalar_lea.hbm %s5048_s6, 16  ;;  %s4283_s23 = scalar_lea.hbm %s5112_s21, 32 }
0x1fa0   : > { %p4280_p10 = scmp.ne.s32.totalorder %s5048_s6, %s4279_s24  ;;  %p4284_p13 = scmp.lt.u32.totalorder %s5048_s6, %s5112_s21 }
0x1fa1   : > { %p4285_p0 = scmp.lt.u32.totalorder %s4283_s23, %s4279_s24  ;;  %p4287_p2 = scmp.lt.u32.totalorder %s4279_s24, %s5048_s6 }
0x1fa2   : > { %p4281_p11 = pnand %p4280_p10, %p4497_p5 }
0x1fa3   : > { %p4286_p1 = por %p4285_p0, %p4284_p13 }
0x1fa4   : > { %p4282_p12 = pneg %p4281_p11 }
0x1fa5   : > { %p4288_p3 = por %p4287_p2, %p4286_p1 }
0x1fa7   : > { %p4289_p4 = pnand %p4288_p3, %p4282_p12 }
0x1fa9   : > { %4292 = shalt.err (!%p4289_p4)
}
0x1faa   : > { %4132 = dma.vmem_to_hbm [thread:$0]  (%p4497_p5), %s5050_s28, 16, %s5048_s6, %s3485_s22  }
0x1fab PF: > { %s5168_s2 = sld [smem:[#allocation8_spill]]  ;;  %p4142_p7 = scmp.ge.s32.totalorder %s4331_s27, 2 }
0x1fad   : > { %p4136_p8 = pnand %p4142_p7, %p4501_p6 }
0x1fb1   : > { %s3522_s7 = sand.u32 1, %s5168_s2  }
0x1fb2   : > { %s3523_s3 = scalar_lea.sflag [#allocation3], %s3522_s7 }
0x1fb3   : > { %4310 = dma.done.wait (!%p4136_p8), %s3523_s3, 16  }
0x1fb4   : > { %4312 = vsyncadd (!%p4136_p8), %s3523_s3, 4294967280  ;;  %s3531_s24 = scalar_lea.sflag [#allocation5], %s3522_s7 }
0x1fb5   : > { %4314 = dma.done.wait (!%p4136_p8), %s3531_s24, 16  }
0x1fb6   : > { %4316 = vsyncadd (!%p4136_p8), %s3531_s24, 4294967280  ;;  %s5170_s27 = sld [smem:[#allocation10_spill]]  ;;  %s5171_s5 = sld [smem:[#allocation9_spill]] }
0x1fb7   : > { %s5172_s26 = sld [smem:[#allocation11_spill]]  ;;  %s5173_s2 = smov %s4323_s25 }
0x1fbc   : > { %p35_p5 = scmp.ge.s32.totalorder %s5170_s27, 4   ;;  %s5174_s25 = smov %s5171_s5 }
0x1fbe   :  { %37 = sbr.rel (!%p35_p5) target bundleno = 14 (0xe), region = 167 }
0x1fc5   :  { %3535 = vsyncpa [#allocation3], 1 }
0x1fc6   :  { %3537 = vsyncpa [#allocation3 + $0x1], 1 }
0x1fc7   :  { %3538 = vsyncpa [#allocation5], 1 }
0x1fc8   :  { %3540 = vsyncpa [#allocation5 + $0x1], 1 }

</bundles_post_ra>
